<compile_context>
chip_gen: v5e
topology: v5e:2x2
jax: 0.10.0
libtpu: 0.0.40
codegen_flags: <defaults>
</compile_context>

<pallas_src>
import functools
import math

import jax
import jax.numpy as jnp
from jax.experimental import pallas as pl
from jax.experimental.pallas import tpu as pltpu


# ----------------------------------------------------------------------------
# small helpers
# ----------------------------------------------------------------------------
def _round_up(n, m):
    return ((n + m - 1) // m) * m


def _pad_rows(x2, row_tile):
    """Pad rows once so the row grid tiles evenly.

    The tile is clamped so the grid has at least 2 steps whenever the row count
    allows it (v7x shards "parallel" grid axes across its 2 TensorCores).
    """
    M = x2.shape[0]
    two_step = _round_up(max((M + 1) // 2, 8), 8)
    tile = max(8, min(row_tile, _round_up(M, 8), two_step))
    Mp = _round_up(M, tile)
    if Mp != M:
        x2 = jnp.pad(x2, ((0, Mp - M), (0, 0)))
    return x2, M, Mp, tile


def _block_bytes(shape, dtype, buffers):
    dims = list(shape)
    if len(dims) >= 1:
        dims[-1] = _round_up(int(dims[-1]), 128)
    if len(dims) >= 2:
        dims[-2] = _round_up(int(dims[-2]), 8)
    n = 1
    for s in dims:
        n *= int(s)
    return n * jnp.dtype(dtype).itemsize * buffers


def _vmem_limit_bytes(blocks):
    """Explicit scoped-VMEM budget sized from the actual tile / resident footprint."""
    need = sum(_block_bytes(*blk) for blk in blocks)
    return int(min(max(2 * need + (4 << 20), 32 << 20), 64 << 20))


# ----------------------------------------------------------------------------
# single-buffering of loop-invariant blocks (probed once; clean fallback)
# ----------------------------------------------------------------------------
_BUFFERED_OK = None


def _probe_buffered_support():
    try:
        def _k(x_ref, w_ref, o_ref):
            o_ref[...] = x_ref[...] + w_ref[...]

        out = pl.pallas_call(
            _k,
            out_shape=jax.ShapeDtypeStruct((16, 128), jnp.float32),
            grid=(2,),
            in_specs=[
                pl.BlockSpec((8, 128), lambda i: (i, 0)),
                pl.BlockSpec((8, 128), lambda i: (0, 0),
                             pipeline_mode=pl.Buffered(1)),
            ],
            out_specs=pl.BlockSpec((8, 128), lambda i: (i, 0)),
        )(jnp.ones((16, 128), jnp.float32), jnp.ones((8, 128), jnp.float32))
        out = jax.block_until_ready(out)
        return bool(jnp.allclose(out, 2.0))
    except Exception:
        return False


def _buffered_ok():
    global _BUFFERED_OK
    if _BUFFERED_OK is None:
        _BUFFERED_OK = _probe_buffered_support()
    return _BUFFERED_OK


def _invariant_spec(block_shape, index_map):
    """BlockSpec for a block whose index never changes across the grid.

    Single-buffered when supported: Pallas double-buffers every input by default,
    which costs 2x VMEM for resident weights with zero pipelining benefit.
    """
    if _buffered_ok():
        return pl.BlockSpec(block_shape, index_map, pipeline_mode=pl.Buffered(1))
    return pl.BlockSpec(block_shape, index_map)


def _invariant_bufs():
    return 1 if _buffered_ok() else 2


# ----------------------------------------------------------------------------
# kernels
# ----------------------------------------------------------------------------
def _layer_norm(y, gamma, beta, eps):
    mu = jnp.mean(y, axis=-1, keepdims=True)
    yc = y - mu
    var = jnp.mean(yc * yc, axis=-1, keepdims=True)
    return yc * jax.lax.rsqrt(var + eps) * gamma + beta


def _linear_kernel(x_ref, w_ref, b_ref, o_ref):
    # x: (tm, K)   w: (K, N) pre-transposed   b: (1, N)   o: (tm, N)
    y = jnp.dot(x_ref[...].astype(w_ref.dtype), w_ref[...],
                preferred_element_type=jnp.float32)
    o_ref[...] = (y + b_ref[...]).astype(o_ref.dtype)


def _attention_kernel(qkv_ref, o_ref, *, head_num, scale, compute_dtype):
    # qkv_ref: (1, S, 3D) fused projection of one batch; o_ref: (1, S, D).
    # TODO(synk): KV-tiled online-softmax (flash) variant for long sequences.
    S = qkv_ref.shape[1]
    D = qkv_ref.shape[2] // 3
    d = D // head_num
    qkv = qkv_ref[0]                                     # (S, 3D) single dense load
    q = (qkv[:, 0:D] * scale).astype(compute_dtype)      # fold 1/sqrt(d) into q (S*D mults)
    kt = qkv[:, D:2 * D].T.astype(compute_dtype)         # (D, S): ONE transpose per step,
                                                         # hoisted out of the head loop
    v = qkv[:, 2 * D:3 * D].astype(compute_dtype)
    heads = []
    for h in range(head_num):                            # static loop, head_num is small
        sl = slice(h * d, (h + 1) * d)
        s = jnp.dot(q[:, sl], kt[sl, :],
                    preferred_element_type=jnp.float32)  # (S, S) plain MXU matmul
        m = jnp.max(s, axis=-1, keepdims=True)           # XLU
        p = jnp.exp(s - m)                               # EUP
        denom = jnp.sum(p, axis=-1, keepdims=True)       # XLU
        attn = p * pl.reciprocal(denom, approx=True)     # EUP reciprocal, not VALU divide
        heads.append(jnp.dot(attn.astype(compute_dtype), v[:, sl],
                             preferred_element_type=jnp.float32))
    # heads reassembled in-kernel -> one lane-dense (S, D) store
    o_ref[0] = jnp.concatenate(heads, axis=-1).astype(o_ref.dtype)


def _proj_add_ln_relu_kernel(ctx_ref, w_ref, b_ref, res_ref, g_ref, beta_ref,
                             o_ref, *, eps):
    # out = relu(LayerNorm1(ctx @ Wo^T + bo + residual))
    y = jnp.dot(ctx_ref[...].astype(w_ref.dtype), w_ref[...],
                preferred_element_type=jnp.float32)
    y = y + b_ref[...] + res_ref[...].astype(jnp.float32)
    ln = _layer_norm(y, g_ref[...], beta_ref[...], eps)
    o_ref[...] = jnp.maximum(ln, 0.0).astype(o_ref.dtype)


def _ffn_block_kernel(a_ref, gff_ref, bff_ref, w1_ref, b1_ref, w2_ref, b2_ref,
                      g2_ref, beta2_ref, o_ref, *, eps_ff, eps_out):
    # out = relu(LN2( relu(LN_ff(a) @ W1 + b1) @ W2 + b2 + a ))
    # TODO(synk): tile W1/W2 along F (extra "arbitrary" grid axis + f32 accumulator)
    #             for large D/F instead of keeping both weights resident.
    a = a_ref[...].astype(jnp.float32)
    h = _layer_norm(a, gff_ref[...], bff_ref[...], eps_ff)
    inter = jnp.dot(h.astype(w1_ref.dtype), w1_ref[...],
                    preferred_element_type=jnp.float32)
    inter = jnp.maximum(inter + b1_ref[...], 0.0)
    f = jnp.dot(inter.astype(w2_ref.dtype), w2_ref[...],
                preferred_element_type=jnp.float32)
    f = f + b2_ref[...] + a
    ln = _layer_norm(f, g2_ref[...], beta2_ref[...], eps_out)
    o_ref[...] = jnp.maximum(ln, 0.0).astype(o_ref.dtype)


# ----------------------------------------------------------------------------
# pallas_call wrappers
# ----------------------------------------------------------------------------
def _qkv_linear_call(xp, w_t, b, *, tm):
    Mp, K = xp.shape
    N = w_t.shape[1]
    inv = _invariant_bufs()
    vmem = _vmem_limit_bytes([
        ((tm, K), xp.dtype, 2), ((K, N), w_t.dtype, inv),
        ((1, N), b.dtype, inv), ((tm, N), xp.dtype, 2)])
    cost = pl.CostEstimate(
        flops=int(2 * Mp * K * N), transcendentals=0,
        bytes_accessed=int((Mp * K + Mp * N) * xp.dtype.itemsize
                           + (K * N + N) * w_t.dtype.itemsize))
    return pl.pallas_call(
        _linear_kernel,
        out_shape=jax.ShapeDtypeStruct((Mp, N), xp.dtype),
        grid_spec=pltpu.PrefetchScalarGridSpec(
            num_scalar_prefetch=0,
            grid=(Mp // tm,),
            in_specs=[
                pl.BlockSpec((tm, K), lambda i: (i, 0)),     # x rows
                _invariant_spec((K, N), lambda i: (0, 0)),   # fused QKV weight (resident)
                _invariant_spec((1, N), lambda i: (0, 0)),   # fused QKV bias
            ],
            out_specs=pl.BlockSpec((tm, N), lambda i: (i, 0)),   # lane-dense 3D-wide output
        ),
        compiler_params=pltpu.CompilerParams(
            dimension_semantics=("parallel",), vmem_limit_bytes=vmem),
        cost_estimate=cost,
    )(xp, w_t, b)


def _attention_call(qkv, *, head_num, scale, compute_dtype):
    B, S, D3 = qkv.shape
    D = D3 // 3
    d = D // head_num
    vmem = _vmem_limit_bytes([((1, S, D3), qkv.dtype, 2),
                              ((1, S, D), qkv.dtype, 2),
                              ((S, S), jnp.float32, head_num)])
    cost = pl.CostEstimate(
        flops=int(4 * B * head_num * S * S * d),
        transcendentals=int(B * head_num * S * S),
        bytes_accessed=int(B * S * (D3 + D) * qkv.dtype.itemsize))
    kern = functools.partial(_attention_kernel, head_num=head_num, scale=scale,
                             compute_dtype=compute_dtype)
    return pl.pallas_call(
        kern,
        out_shape=jax.ShapeDtypeStruct((B, S, D), qkv.dtype),
        grid_spec=pltpu.PrefetchScalarGridSpec(
            num_scalar_prefetch=0,
            grid=(B,),                                    # coarse: one step per batch
            in_specs=[pl.BlockSpec((1, S, D3), lambda i: (i, 0, 0))],
            out_specs=pl.BlockSpec((1, S, D), lambda i: (i, 0, 0)),  # lane-dense (S, D)
        ),
        compiler_params=pltpu.CompilerParams(
            dimension_semantics=("parallel",), vmem_limit_bytes=vmem),
        cost_estimate=cost,
    )(qkv)


def _proj_add_ln_relu_call(ctxp, w_t, b, resp, g, beta, *, eps, tm):
    Mp, K = ctxp.shape
    N = w_t.shape[1]
    inv = _invariant_bufs()
    vmem = _vmem_limit_bytes([
        ((tm, K), ctxp.dtype, 2), ((K, N), w_t.dtype, inv), ((1, N), b.dtype, inv),
        ((tm, N), resp.dtype, 2), ((1, N), g.dtype, inv), ((1, N), beta.dtype, inv),
        ((tm, N), ctxp.dtype, 2)])
    cost = pl.CostEstimate(
        flops=int(2 * Mp * K * N + 10 * Mp * N),
        transcendentals=int(Mp),
        bytes_accessed=int((2 * Mp * K + Mp * N) * ctxp.dtype.itemsize
                           + K * N * w_t.dtype.itemsize + 3 * N * 4))
    kern = functools.partial(_proj_add_ln_relu_kernel, eps=eps)
    return pl.pallas_call(
        kern,
        out_shape=jax.ShapeDtypeStruct((Mp, N), ctxp.dtype),
        grid_spec=pltpu.PrefetchScalarGridSpec(
            num_scalar_prefetch=0,
            grid=(Mp // tm,),
            in_specs=[
                pl.BlockSpec((tm, K), lambda i: (i, 0)),     # attention context rows
                _invariant_spec((K, N), lambda i: (0, 0)),   # Wo^T (resident)
                _invariant_spec((1, N), lambda i: (0, 0)),   # bo
                pl.BlockSpec((tm, N), lambda i: (i, 0)),     # residual rows (padded x reused)
                _invariant_spec((1, N), lambda i: (0, 0)),   # gamma1
                _invariant_spec((1, N), lambda i: (0, 0)),   # beta1
            ],
            out_specs=pl.BlockSpec((tm, N), lambda i: (i, 0)),
        ),
        compiler_params=pltpu.CompilerParams(
            dimension_semantics=("parallel",), vmem_limit_bytes=vmem),
        cost_estimate=cost,
    )(ctxp, w_t, b, resp, g, beta)


def _ffn_block_call(ap, gff, bff, w1_t, b1, w2_t, b2, g2, beta2, *,
                    eps_ff, eps_out, tm):
    Mp, D = ap.shape
    F = w1_t.shape[1]
    inv = _invariant_bufs()
    vmem = _vmem_limit_bytes([
        ((tm, D), ap.dtype, 2),
        ((1, D), gff.dtype, inv), ((1, D), bff.dtype, inv),
        ((D, F), w1_t.dtype, inv), ((1, F), b1.dtype, inv),
        ((F, D), w2_t.dtype, inv), ((1, D), b2.dtype, inv),
        ((1, D), g2.dtype, inv), ((1, D), beta2.dtype, inv),
        ((tm, F), jnp.float32, 1),               # live intermediate inside the kernel
        ((tm, D), ap.dtype, 2)])
    cost = pl.CostEstimate(
        flops=int(4 * Mp * D * F + 20 * Mp * D),
        transcendentals=int(2 * Mp),
        bytes_accessed=int(2 * Mp * D * ap.dtype.itemsize
                           + 2 * D * F * w1_t.dtype.itemsize + (F + 5 * D) * 4))
    kern = functools.partial(_ffn_block_kernel, eps_ff=eps_ff, eps_out=eps_out)
    return pl.pallas_call(
        kern,
        out_shape=jax.ShapeDtypeStruct((Mp, D), ap.dtype),
        grid_spec=pltpu.PrefetchScalarGridSpec(
            num_scalar_prefetch=0,
            grid=(Mp // tm,),
            in_specs=[
                pl.BlockSpec((tm, D), lambda i: (i, 0)),     # a rows (still padded)
                _invariant_spec((1, D), lambda i: (0, 0)),   # gamma_ff
                _invariant_spec((1, D), lambda i: (0, 0)),   # beta_ff
                _invariant_spec((D, F), lambda i: (0, 0)),   # W1^T (resident)
                _invariant_spec((1, F), lambda i: (0, 0)),   # b1
                _invariant_spec((F, D), lambda i: (0, 0)),   # W2^T (resident)
                _invariant_spec((1, D), lambda i: (0, 0)),   # b2
                _invariant_spec((1, D), lambda i: (0, 0)),   # gamma2
                _invariant_spec((1, D), lambda i: (0, 0)),   # beta2
            ],
            out_specs=pl.BlockSpec((tm, D), lambda i: (i, 0)),
        ),
        compiler_params=pltpu.CompilerParams(
            dimension_semantics=("parallel",), vmem_limit_bytes=vmem),
        cost_estimate=cost,
    )(ap, gff, bff, w1_t, b1, w2_t, b2, g2, beta2)


# ----------------------------------------------------------------------------
# one-time parameter packing (hoisted OUT of the forward)
# ----------------------------------------------------------------------------
def pack_params(params, compute_dtype=jnp.float32):
    """Pack PyTorch-convention weights once, outside the forward.

    * every nn.Linear weight is transposed to [in, out] so kernels do x @ W,
    * Q/K/V weights/biases are fused into a single [D, 3D] slab / (1, 3D) bias,
    * weights are stored in `compute_dtype` (use jnp.bfloat16 on v6e/v7x for the
      ~2x MXU rate and half the weight bytes; LN/softmax epilogues stay f32),
    * biases / gamma / beta become (1, N) f32 rows.
    """
    cd = compute_dtype

    def row(v):
        return jnp.asarray(v, jnp.float32).reshape(1, -1)

    D = params["wq"].shape[0]
    return dict(
        w_qkv_t=jnp.concatenate(
            [params["wq"].T, params["wk"].T, params["wv"].T], axis=1).astype(cd),
        b_qkv=jnp.concatenate(
            [params["bq"], params["bk"], params["bv"]]
        ).reshape(1, 3 * D).astype(jnp.float32),
        wo_t=params["wo"].T.astype(cd), bo=row(params["bo"]),
        g1=row(params["g1"]), beta1=row(params["beta1"]),
        gff=row(params["gff"]), bff=row(params["bff"]),
        w1_t=params["w1"].T.astype(cd), b1=row(params["b1"]),
        w2_t=params["w2"].T.astype(cd), b2=row(params["b2"]),
        g2=row(params["g2"]), beta2=row(params["beta2"]),
    )


# ----------------------------------------------------------------------------
# full Transformer_Encoder forward
# ----------------------------------------------------------------------------
def transformer_encoder_forward(x, packed, *, head_num, row_tile=256):
    """x: [B, S, D]; packed: output of pack_params()."""
    B, S, D = x.shape
    assert D % head_num == 0
    d = D // head_num
    scale = 1.0 / math.sqrt(d)
    compute_dtype = packed["w_qkv_t"].dtype

    # Pad the flattened rows ONCE; xp is reused as the LayerNorm1 residual and
    # intermediate activations stay padded until the final slice.
    x2 = x.reshape(B * S, D)
    xp, M, Mp, tm = _pad_rows(x2, row_tile)

    # fused QKV projection
    qkv = _qkv_linear_call(xp, packed["w_qkv_t"], packed["b_qkv"], tm=tm)   # (Mp, 3D)
    if Mp != M:
        qkv = qkv[:M]
    qkv = qkv.reshape(B, S, 3 * D)

    # per-batch multi-head SDPA; heads assembled in-kernel -> (B, S, D)
    ctx = _attention_call(qkv, head_num=head_num, scale=scale,
                          compute_dtype=compute_dtype)

    ctx2 = ctx.reshape(B * S, D)
    if Mp != M:
        ctx2 = jnp.pad(ctx2, ((0, Mp - M), (0, 0)))

    # out-projection + residual + LayerNorm1 + ReLU (eps = 1e-5)
    a = _proj_add_ln_relu_call(ctx2, packed["wo_t"], packed["bo"], xp,
                               packed["g1"], packed["beta1"], eps=1e-5, tm=tm)

    # FFN block: LN_ff(1e-6) -> W1 -> ReLU -> W2 -> +res -> LN2(1e-5) -> ReLU
    out = _ffn_block_call(a, packed["gff"], packed["bff"],
                          packed["w1_t"], packed["b1"],
                          packed["w2_t"], packed["b2"],
                          packed["g2"], packed["beta2"],
                          eps_ff=1e-6, eps_out=1e-5, tm=tm)
    if Mp != M:
        out = out[:M]
    return out.reshape(B, S, D)


# ----------------------------------------------------------------------------
# pure-JAX reference (mirrors the PyTorch module, dropout = identity)
# ----------------------------------------------------------------------------
def _reference_forward(x, p):
    B, S, D = x.shape
    H = p["head_num"]
    d = D // H

    def linear(t, w, b):  # torch convention: w [out, in]
        return jnp.einsum("...i,oi->...o", t, w) + b

    def layer_norm(t, g, b, eps):
        mu = jnp.mean(t, axis=-1, keepdims=True)
        var = jnp.mean((t - mu) ** 2, axis=-1, keepdims=True)
        return (t - mu) / jnp.sqrt(var + eps) * g + b

    q = linear(x, p["wq"], p["bq"]).reshape(B, S, H, d).transpose(0, 2, 1, 3)
    k = linear(x, p["wk"], p["bk"]).reshape(B, S, H, d).transpose(0, 2, 1, 3)
    v = linear(x, p["wv"], p["bv"]).reshape(B, S, H, d).transpose(0, 2, 1, 3)
    s = jnp.einsum("bhqd,bhkd->bhqk", q, k) / jnp.sqrt(jnp.float32(d))
    attn = jax.nn.softmax(s, axis=-1)
    ctx = jnp.einsum("bhqk,bhkd->bhqd", attn, v).transpose(0, 2, 1, 3).reshape(B, S, D)
    h = linear(ctx, p["wo"], p["bo"])

    a = jax.nn.relu(layer_norm(h + x, p["g1"], p["beta1"], 1e-5))
    hh = layer_norm(a, p["gff"], p["bff"], 1e-6)
    inter = jax.nn.relu(linear(hh, p["w1"], p["b1"]))
    f = linear(inter, p["w2"], p["b2"])
    return jax.nn.relu(layer_norm(f + a, p["g2"], p["beta2"], 1e-5))


# ----------------------------------------------------------------------------
# demo / self-test
# ----------------------------------------------------------------------------
if __name__ == "__main__":
    key = jax.random.PRNGKey(0)
    ks = jax.random.split(key, 20)

    B, S, D, H, F = 2, 8, 32, 4, 64   # batch, seq, input_dim, head_num, ff_dim

    def xavier_uniform(k, out_f, in_f):
        bound = math.sqrt(6.0 / (in_f + out_f))
        return jax.random.uniform(k, (out_f, in_f), jnp.float32, -bound, bound)

    def bias_init(k, out_f, in_f):
        bound = 1.0 / math.sqrt(in_f)
        return jax.random.uniform(k, (out_f,), jnp.float32, -bound, bound)

    def default_linear(k, out_f, in_f):
        kw, kb = jax.random.split(k)
        bound = 1.0 / math.sqrt(in_f)
        w = jax.random.uniform(kw, (out_f, in_f), jnp.float32, -bound, bound)
        b = jax.random.uniform(kb, (out_f,), jnp.float32, -bound, bound)
        return w, b

    wq = xavier_uniform(ks[1], D, D); bq = bias_init(ks[2], D, D)
    wk = xavier_uniform(ks[3], D, D); bk = bias_init(ks[4], D, D)
    wv = xavier_uniform(ks[5], D, D); bv = bias_init(ks[6], D, D)
    wo, bo = default_linear(ks[7], D, D)
    w1, b1 = default_linear(ks[8], F, D)
    w2, b2 = default_linear(ks[9], D, F)

    g1 = 1.0 + 0.05 * jax.random.normal(ks[10], (D,), jnp.float32)
    beta1 = 0.05 * jax.random.normal(ks[11], (D,), jnp.float32)
    gff = 1.0 + 0.05 * jax.random.normal(ks[12], (D,), jnp.float32)
    bff = 0.05 * jax.random.normal(ks[13], (D,), jnp.float32)
    g2 = 1.0 + 0.05 * jax.random.normal(ks[14], (D,), jnp.float32)
    beta2 = 0.05 * jax.random.normal(ks[15], (D,), jnp.float32)

    params = dict(head_num=H,
                  wq=wq, bq=bq, wk=wk, bk=bk, wv=wv, bv=bv, wo=wo, bo=bo,
                  g1=g1, beta1=beta1, gff=gff, bff=bff,
                  w1=w1, b1=b1, w2=w2, b2=b2, g2=g2, beta2=beta2)

    x = jax.random.normal(ks[16], (B, S, D), jnp.float32)

    # one-time packing (hoisted out of the forward); use compute_dtype=jnp.bfloat16
    # on v6e/v7x for the faster MXU path (re-verify with a looser tolerance).
    packed = pack_params(params, compute_dtype=jnp.float32)

    _buffered_ok()   # probe Buffered(1) support once, outside the jitted forward

    fwd = jax.jit(functools.partial(transformer_encoder_forward, head_num=H))
    out = jax.block_until_ready(fwd(x, packed))

    with jax.default_matmul_precision("highest"):
        ref = jax.block_until_ready(_reference_forward(x, params))

    assert out.shape == ref.shape, f"shape mismatch {out.shape} vs {ref.shape}"
    # tolerance covers the approx EUP reciprocal in the softmax denominator and
    # MXU vs XLA f32-matmul rounding differences.
    assert jnp.allclose(out, ref, atol=1e-2, rtol=1e-2), (
        f"mismatch vs reference, max abs err = "
        f"{float(jnp.max(jnp.abs(out - ref)))}")

    print("KERNEL_OK")
</pallas_src>

<mosaic_0001>
module attributes {stable_mosaic.version = 11 : i64} {
  func.func @_k(%arg0: i32, %arg1: memref<8x128xf32, #tpu.memory_space<vmem>>, %arg2: memref<8x128xf32, #tpu.memory_space<vmem>>, %arg3: memref<8x128xf32, #tpu.memory_space<vmem>>) attributes {dimension_semantics = [#tpu.dimension_semantics<arbitrary>], iteration_bounds = array<i64: 2>, scalar_prefetch = 0 : i64, scratch_operands = 0 : i64, tpu.core_type = #tpu.core_type<tc>, window_params = [{transform_indices = @transform_0, window_bounds = array<i64: 8, 128>}, {pipeline_mode = #tpu.pipeline_mode<synchronous>, transform_indices = @transform_1, window_bounds = array<i64: 8, 128>}, {transform_indices = @transform_2, window_bounds = array<i64: 8, 128>}]} {
    %c0 = arith.constant 0 : index
    %c0_0 = arith.constant 0 : index
    %0 = vector.load %arg1[%c0, %c0_0] : memref<8x128xf32, #tpu.memory_space<vmem>>, vector<8x128xf32>
    %c0_1 = arith.constant 0 : index
    %c0_2 = arith.constant 0 : index
    %1 = vector.load %arg2[%c0_1, %c0_2] : memref<8x128xf32, #tpu.memory_space<vmem>>, vector<8x128xf32>
    %2 = arith.addf %0, %1 : vector<8x128xf32>
    %c0_3 = arith.constant 0 : index
    %c0_4 = arith.constant 0 : index
    %3 = vector.load %arg3[%c0_3, %c0_4] : memref<8x128xf32, #tpu.memory_space<vmem>>, vector<8x128xf32>
    tpu.vector_store %arg3[%c0_3, %c0_4], %2 {strides = array<i32>} : memref<8x128xf32, #tpu.memory_space<vmem>>, vector<8x128xf32>,
    return
  }
  func.func @transform_0(%arg0: i32) -> (i32, i32) {
    %c0_i32 = arith.constant 0 : i32
    %c0_i32_0 = arith.constant 0 : i32
    return %arg0, %c0_i32 : i32, i32
  }
  func.func @transform_1(%arg0: i32) -> (i32, i32) {
    %c0_i32 = arith.constant 0 : i32
    %c0_i32_0 = arith.constant 0 : i32
    %c0_i32_1 = arith.constant 0 : i32
    return %c0_i32, %c0_i32_0 : i32, i32
  }
  func.func @transform_2(%arg0: i32) -> (i32, i32) {
    %c0_i32 = arith.constant 0 : i32
    %c0_i32_0 = arith.constant 0 : i32
    return %arg0, %c0_i32 : i32, i32
  }
}

module attributes {stable_mosaic.version = 11 : i64} {
  func.func @_proj_add_ln_relu_kernel(%arg0: i32, %arg1: memref<8x32xf32, #tpu.memory_space<vmem>>, %arg2: memref<32x32xf32, #tpu.memory_space<vmem>>, %arg3: memref<1x32xf32, #tpu.memory_space<vmem>>, %arg4: memref<8x32xf32, #tpu.memory_space<vmem>>, %arg5: memref<1x32xf32, #tpu.memory_space<vmem>>, %arg6: memref<1x32xf32, #tpu.memory_space<vmem>>, %arg7: memref<8x32xf32, #tpu.memory_space<vmem>>) attributes {dimension_semantics = [#tpu.dimension_semantics<parallel>], iteration_bounds = array<i64: 2>, scalar_prefetch = 0 : i64, scratch_operands = 0 : i64, tpu.core_type = #tpu.core_type<tc>, window_params = [{transform_indices = @transform_0, window_bounds = array<i64: 8, 32>}, {pipeline_mode = #tpu.pipeline_mode<synchronous>, transform_indices = @transform_1, window_bounds = array<i64: 32, 32>}, {pipeline_mode = #tpu.pipeline_mode<synchronous>, transform_indices = @transform_2, window_bounds = array<i64: 1, 32>}, {transform_indices = @transform_3, window_bounds = array<i64: 8, 32>}, {pipeline_mode = #tpu.pipeline_mode<synchronous>, transform_indices = @transform_4, window_bounds = array<i64: 1, 32>}, {pipeline_mode = #tpu.pipeline_mode<synchronous>, transform_indices = @transform_5, window_bounds = array<i64: 1, 32>}, {transform_indices = @transform_6, window_bounds = array<i64: 8, 32>}]} {
    %c0 = arith.constant 0 : index
    %c0_0 = arith.constant 0 : index
    %0 = vector.load %arg1[%c0, %c0_0] : memref<8x32xf32, #tpu.memory_space<vmem>>, vector<8x32xf32>
    %c0_1 = arith.constant 0 : index
    %c0_2 = arith.constant 0 : index
    %1 = vector.load %arg2[%c0_1, %c0_2] : memref<32x32xf32, #tpu.memory_space<vmem>>, vector<32x32xf32>
    %cst = arith.constant dense<0.000000e+00> : vector<8x32xf32>
    %2 = tpu.matmul %0, %1, %cst {dimension_numbers = #tpu.dot_dimension_numbers<[1], [0], [0], [1], [0, 0, 1, 1], [], []>} : vector<8x32xf32>, vector<32x32xf32>, vector<8x32xf32> -> vector<8x32xf32>
    %c0_3 = arith.constant 0 : index
    %c0_4 = arith.constant 0 : index
    %3 = vector.load %arg3[%c0_3, %c0_4] : memref<1x32xf32, #tpu.memory_space<vmem>>, vector<1x32xf32>
    %4 = vector.broadcast %3 : vector<1x32xf32> to vector<8x32xf32>
    %5 = arith.addf %2, %4 : vector<8x32xf32>
    %c0_5 = arith.constant 0 : index
    %c0_6 = arith.constant 0 : index
    %6 = vector.load %arg4[%c0_5, %c0_6] : memref<8x32xf32, #tpu.memory_space<vmem>>, vector<8x32xf32>
    %7 = arith.addf %5, %6 : vector<8x32xf32>
    %c0_7 = arith.constant 0 : index
    %c0_8 = arith.constant 0 : index
    %8 = vector.load %arg5[%c0_7, %c0_8] : memref<1x32xf32, #tpu.memory_space<vmem>>, vector<1x32xf32>
    %c0_9 = arith.constant 0 : index
    %c0_10 = arith.constant 0 : index
    %9 = vector.load %arg6[%c0_9, %c0_10] : memref<1x32xf32, #tpu.memory_space<vmem>>, vector<1x32xf32>
    %cst_11 = arith.constant dense<0.000000e+00> : vector<8xf32>
    %10 = vector.multi_reduction <add>, %7, %cst_11 [1] : vector<8x32xf32> to vector<8xf32>
    %11 = vector.shape_cast %10 : vector<8xf32> to vector<8x1xf32>
    %cst_12 = arith.constant 3.200000e+01 : f32
    %12 = vector.broadcast %cst_12 : f32 to vector<8x1xf32>
    %13 = arith.divf %11, %12 : vector<8x1xf32>
    %14 = vector.broadcast %13 : vector<8x1xf32> to vector<8x32xf32>
    %15 = arith.subf %7, %14 : vector<8x32xf32>
    %16 = arith.mulf %15, %15 : vector<8x32xf32>
    %cst_13 = arith.constant dense<0.000000e+00> : vector<8xf32>
    %17 = vector.multi_reduction <add>, %16, %cst_13 [1] : vector<8x32xf32> to vector<8xf32>
    %18 = vector.shape_cast %17 : vector<8xf32> to vector<8x1xf32>
    %cst_14 = arith.constant 3.200000e+01 : f32
    %19 = vector.broadcast %cst_14 : f32 to vector<8x1xf32>
    %20 = arith.divf %18, %19 : vector<8x1xf32>
    %cst_15 = arith.constant 9.99999974E-6 : f32
    %21 = vector.broadcast %cst_15 : f32 to vector<8x1xf32>
    %22 = arith.addf %20, %21 : vector<8x1xf32>
    %23 = math.rsqrt %22 : vector<8x1xf32>
    %24 = vector.broadcast %23 : vector<8x1xf32> to vector<8x32xf32>
    %25 = arith.mulf %15, %24 : vector<8x32xf32>
    %26 = vector.broadcast %8 : vector<1x32xf32> to vector<8x32xf32>
    %27 = arith.mulf %25, %26 : vector<8x32xf32>
    %28 = vector.broadcast %9 : vector<1x32xf32> to vector<8x32xf32>
    %29 = arith.addf %27, %28 : vector<8x32xf32>
    %cst_16 = arith.constant 0.000000e+00 : f32
    %30 = vector.broadcast %cst_16 : f32 to vector<8x32xf32>
    %31 = arith.maximumf %29, %30 : vector<8x32xf32>
    %c0_17 = arith.constant 0 : index
    %c0_18 = arith.constant 0 : index
    %32 = vector.load %arg7[%c0_17, %c0_18] : memref<8x32xf32, #tpu.memory_space<vmem>>, vector<8x32xf32>
    tpu.vector_store %arg7[%c0_17, %c0_18], %31 {strides = array<i32>} : memref<8x32xf32, #tpu.memory_space<vmem>>, vector<8x32xf32>,
    return
  }
  func.func @transform_0(%arg0: i32) -> (i32, i32) {
    %c0_i32 = arith.constant 0 : i32
    %c0_i32_0 = arith.constant 0 : i32
    return %arg0, %c0_i32 : i32, i32
  }
  func.func @transform_1(%arg0: i32) -> (i32, i32) {
    %c0_i32 = arith.constant 0 : i32
    %c0_i32_0 = arith.constant 0 : i32
    %c0_i32_1 = arith.constant 0 : i32
    return %c0_i32, %c0_i32_0 : i32, i32
  }
  func.func @transform_2(%arg0: i32) -> (i32, i32) {
    %c0_i32 = arith.constant 0 : i32
    %c0_i32_0 = arith.constant 0 : i32
    %c0_i32_1 = arith.constant 0 : i32
    return %c0_i32, %c0_i32_0 : i32, i32
  }
  func.func @transform_3(%arg0: i32) -> (i32, i32) {
    %c0_i32 = arith.constant 0 : i32
    %c0_i32_0 = arith.constant 0 : i32
    return %arg0, %c0_i32 : i32, i32
  }
  func.func @transform_4(%arg0: i32) -> (i32, i32) {
    %c0_i32 = arith.constant 0 : i32
    %c0_i32_0 = arith.constant 0 : i32
    %c0_i32_1 = arith.constant 0 : i32
    return %c0_i32, %c0_i32_0 : i32, i32
  }
  func.func @transform_5(%arg0: i32) -> (i32, i32) {
    %c0_i32 = arith.constant 0 : i32
    %c0_i32_0 = arith.constant 0 : i32
    %c0_i32_1 = arith.constant 0 : i32
    return %c0_i32, %c0_i32_0 : i32, i32
  }
  func.func @transform_6(%arg0: i32) -> (i32, i32) {
    %c0_i32 = arith.constant 0 : i32
    %c0_i32_0 = arith.constant 0 : i32
    return %arg0, %c0_i32 : i32, i32
  }
}

module attributes {stable_mosaic.version = 11 : i64} {
  func.func @_linear_kernel(%arg0: i32, %arg1: memref<8x32xf32, #tpu.memory_space<vmem>>, %arg2: memref<32x96xf32, #tpu.memory_space<vmem>>, %arg3: memref<1x96xf32, #tpu.memory_space<vmem>>, %arg4: memref<8x96xf32, #tpu.memory_space<vmem>>) attributes {dimension_semantics = [#tpu.dimension_semantics<parallel>], iteration_bounds = array<i64: 2>, scalar_prefetch = 0 : i64, scratch_operands = 0 : i64, tpu.core_type = #tpu.core_type<tc>, window_params = [{transform_indices = @transform_0, window_bounds = array<i64: 8, 32>}, {pipeline_mode = #tpu.pipeline_mode<synchronous>, transform_indices = @transform_1, window_bounds = array<i64: 32, 96>}, {pipeline_mode = #tpu.pipeline_mode<synchronous>, transform_indices = @transform_2, window_bounds = array<i64: 1, 96>}, {transform_indices = @transform_3, window_bounds = array<i64: 8, 96>}]} {
    %c0 = arith.constant 0 : index
    %c0_0 = arith.constant 0 : index
    %0 = vector.load %arg1[%c0, %c0_0] : memref<8x32xf32, #tpu.memory_space<vmem>>, vector<8x32xf32>
    %c0_1 = arith.constant 0 : index
    %c0_2 = arith.constant 0 : index
    %1 = vector.load %arg2[%c0_1, %c0_2] : memref<32x96xf32, #tpu.memory_space<vmem>>, vector<32x96xf32>
    %cst = arith.constant dense<0.000000e+00> : vector<8x96xf32>
    %2 = tpu.matmul %0, %1, %cst {dimension_numbers = #tpu.dot_dimension_numbers<[1], [0], [0], [1], [0, 0, 1, 1], [], []>} : vector<8x32xf32>, vector<32x96xf32>, vector<8x96xf32> -> vector<8x96xf32>
    %c0_3 = arith.constant 0 : index
    %c0_4 = arith.constant 0 : index
    %3 = vector.load %arg3[%c0_3, %c0_4] : memref<1x96xf32, #tpu.memory_space<vmem>>, vector<1x96xf32>
    %4 = vector.broadcast %3 : vector<1x96xf32> to vector<8x96xf32>
    %5 = arith.addf %2, %4 : vector<8x96xf32>
    %c0_5 = arith.constant 0 : index
    %c0_6 = arith.constant 0 : index
    %6 = vector.load %arg4[%c0_5, %c0_6] : memref<8x96xf32, #tpu.memory_space<vmem>>, vector<8x96xf32>
    tpu.vector_store %arg4[%c0_5, %c0_6], %5 {strides = array<i32>} : memref<8x96xf32, #tpu.memory_space<vmem>>, vector<8x96xf32>,
    return
  }
  func.func @transform_0(%arg0: i32) -> (i32, i32) {
    %c0_i32 = arith.constant 0 : i32
    %c0_i32_0 = arith.constant 0 : i32
    return %arg0, %c0_i32 : i32, i32
  }
  func.func @transform_1(%arg0: i32) -> (i32, i32) {
    %c0_i32 = arith.constant 0 : i32
    %c0_i32_0 = arith.constant 0 : i32
    %c0_i32_1 = arith.constant 0 : i32
    return %c0_i32, %c0_i32_0 : i32, i32
  }
  func.func @transform_2(%arg0: i32) -> (i32, i32) {
    %c0_i32 = arith.constant 0 : i32
    %c0_i32_0 = arith.constant 0 : i32
    %c0_i32_1 = arith.constant 0 : i32
    return %c0_i32, %c0_i32_0 : i32, i32
  }
  func.func @transform_3(%arg0: i32) -> (i32, i32) {
    %c0_i32 = arith.constant 0 : i32
    %c0_i32_0 = arith.constant 0 : i32
    return %arg0, %c0_i32 : i32, i32
  }
}

module attributes {stable_mosaic.version = 11 : i64} {
  func.func @_attention_kernel(%arg0: i32, %arg1: memref<1x8x96xf32, #tpu.memory_space<vmem>>, %arg2: memref<1x8x32xf32, #tpu.memory_space<vmem>>) attributes {dimension_semantics = [#tpu.dimension_semantics<parallel>], iteration_bounds = array<i64: 2>, scalar_prefetch = 0 : i64, scratch_operands = 0 : i64, tpu.core_type = #tpu.core_type<tc>, window_params = [{transform_indices = @transform_0, window_bounds = array<i64: 1, 8, 96>}, {transform_indices = @transform_1, window_bounds = array<i64: 1, 8, 32>}]} {
    %c0 = arith.constant 0 : index
    %c0_0 = arith.constant 0 : index
    %c0_1 = arith.constant 0 : index
    %0 = vector.load %arg1[%c0, %c0_0, %c0_1] : memref<1x8x96xf32, #tpu.memory_space<vmem>>, vector<1x8x96xf32>
    %1 = vector.shape_cast %0 : vector<1x8x96xf32> to vector<8x96xf32>
    %2 = vector.extract_strided_slice %1 {offsets = [0, 0], sizes = [8, 32], strides = [1, 1]} : vector<8x96xf32> to vector<8x32xf32>
    %cst = arith.constant 0.353553385 : f32
    %3 = vector.broadcast %cst : f32 to vector<8x32xf32>
    %4 = arith.mulf %2, %3 : vector<8x32xf32>
    %5 = vector.extract_strided_slice %1 {offsets = [0, 32], sizes = [8, 32], strides = [1, 1]} : vector<8x96xf32> to vector<8x32xf32>
    %6 = tpu.transpose %5, [1, 0] : vector<8x32xf32> -> vector<32x8xf32>
    %7 = vector.extract_strided_slice %1 {offsets = [0, 64], sizes = [8, 32], strides = [1, 1]} : vector<8x96xf32> to vector<8x32xf32>
    %8 = vector.extract_strided_slice %4 {offsets = [0, 0], sizes = [8, 8], strides = [1, 1]} : vector<8x32xf32> to vector<8x8xf32>
    %9 = vector.extract_strided_slice %6 {offsets = [0, 0], sizes = [8, 8], strides = [1, 1]} : vector<32x8xf32> to vector<8x8xf32>
    %cst_2 = arith.constant dense<0.000000e+00> : vector<8x8xf32>
    %10 = tpu.matmul %8, %9, %cst_2 {dimension_numbers = #tpu.dot_dimension_numbers<[1], [0], [0], [1], [0, 0, 1, 1], [], []>} : vector<8x8xf32>, vector<8x8xf32>, vector<8x8xf32> -> vector<8x8xf32>
    %cst_3 = arith.constant dense<0xFF800000> : vector<8xf32>
    %11 = vector.multi_reduction <maximumf>, %10, %cst_3 [1] : vector<8x8xf32> to vector<8xf32>
    %12 = vector.shape_cast %11 : vector<8xf32> to vector<8x1xf32>
    %13 = vector.broadcast %12 : vector<8x1xf32> to vector<8x8xf32>
    %14 = arith.subf %10, %13 : vector<8x8xf32>
    %15 = math.exp %14 : vector<8x8xf32>
    %cst_4 = arith.constant dense<0.000000e+00> : vector<8xf32>
    %16 = vector.multi_reduction <add>, %15, %cst_4 [1] : vector<8x8xf32> to vector<8xf32>
    %17 = vector.shape_cast %16 : vector<8xf32> to vector<8x1xf32>
    %18 = tpu.reciprocal %17 {approx = true} : vector<8x1xf32> -> vector<8x1xf32>
    %19 = vector.broadcast %18 : vector<8x1xf32> to vector<8x8xf32>
    %20 = arith.mulf %15, %19 : vector<8x8xf32>
    %21 = vector.extract_strided_slice %7 {offsets = [0, 0], sizes = [8, 8], strides = [1, 1]} : vector<8x32xf32> to vector<8x8xf32>
    %cst_5 = arith.constant dense<0.000000e+00> : vector<8x8xf32>
    %22 = tpu.matmul %20, %21, %cst_5 {dimension_numbers = #tpu.dot_dimension_numbers<[1], [0], [0], [1], [0, 0, 1, 1], [], []>} : vector<8x8xf32>, vector<8x8xf32>, vector<8x8xf32> -> vector<8x8xf32>
    %23 = vector.extract_strided_slice %4 {offsets = [0, 8], sizes = [8, 8], strides = [1, 1]} : vector<8x32xf32> to vector<8x8xf32>
    %24 = vector.extract_strided_slice %6 {offsets = [8, 0], sizes = [8, 8], strides = [1, 1]} : vector<32x8xf32> to vector<8x8xf32>
    %cst_6 = arith.constant dense<0.000000e+00> : vector<8x8xf32>
    %25 = tpu.matmul %23, %24, %cst_6 {dimension_numbers = #tpu.dot_dimension_numbers<[1], [0], [0], [1], [0, 0, 1, 1], [], []>} : vector<8x8xf32>, vector<8x8xf32>, vector<8x8xf32> -> vector<8x8xf32>
    %cst_7 = arith.constant dense<0xFF800000> : vector<8xf32>
    %26 = vector.multi_reduction <maximumf>, %25, %cst_7 [1] : vector<8x8xf32> to vector<8xf32>
    %27 = vector.shape_cast %26 : vector<8xf32> to vector<8x1xf32>
    %28 = vector.broadcast %27 : vector<8x1xf32> to vector<8x8xf32>
    %29 = arith.subf %25, %28 : vector<8x8xf32>
    %30 = math.exp %29 : vector<8x8xf32>
    %cst_8 = arith.constant dense<0.000000e+00> : vector<8xf32>
    %31 = vector.multi_reduction <add>, %30, %cst_8 [1] : vector<8x8xf32> to vector<8xf32>
    %32 = vector.shape_cast %31 : vector<8xf32> to vector<8x1xf32>
    %33 = tpu.reciprocal %32 {approx = true} : vector<8x1xf32> -> vector<8x1xf32>
    %34 = vector.broadcast %33 : vector<8x1xf32> to vector<8x8xf32>
    %35 = arith.mulf %30, %34 : vector<8x8xf32>
    %36 = vector.extract_strided_slice %7 {offsets = [0, 8], sizes = [8, 8], strides = [1, 1]} : vector<8x32xf32> to vector<8x8xf32>
    %cst_9 = arith.constant dense<0.000000e+00> : vector<8x8xf32>
    %37 = tpu.matmul %35, %36, %cst_9 {dimension_numbers = #tpu.dot_dimension_numbers<[1], [0], [0], [1], [0, 0, 1, 1], [], []>} : vector<8x8xf32>, vector<8x8xf32>, vector<8x8xf32> -> vector<8x8xf32>
    %38 = vector.extract_strided_slice %4 {offsets = [0, 16], sizes = [8, 8], strides = [1, 1]} : vector<8x32xf32> to vector<8x8xf32>
    %39 = vector.extract_strided_slice %6 {offsets = [16, 0], sizes = [8, 8], strides = [1, 1]} : vector<32x8xf32> to vector<8x8xf32>
    %cst_10 = arith.constant dense<0.000000e+00> : vector<8x8xf32>
    %40 = tpu.matmul %38, %39, %cst_10 {dimension_numbers = #tpu.dot_dimension_numbers<[1], [0], [0], [1], [0, 0, 1, 1], [], []>} : vector<8x8xf32>, vector<8x8xf32>, vector<8x8xf32> -> vector<8x8xf32>
    %cst_11 = arith.constant dense<0xFF800000> : vector<8xf32>
    %41 = vector.multi_reduction <maximumf>, %40, %cst_11 [1] : vector<8x8xf32> to vector<8xf32>
    %42 = vector.shape_cast %41 : vector<8xf32> to vector<8x1xf32>
    %43 = vector.broadcast %42 : vector<8x1xf32> to vector<8x8xf32>
    %44 = arith.subf %40, %43 : vector<8x8xf32>
    %45 = math.exp %44 : vector<8x8xf32>
    %cst_12 = arith.constant dense<0.000000e+00> : vector<8xf32>
    %46 = vector.multi_reduction <add>, %45, %cst_12 [1] : vector<8x8xf32> to vector<8xf32>
    %47 = vector.shape_cast %46 : vector<8xf32> to vector<8x1xf32>
    %48 = tpu.reciprocal %47 {approx = true} : vector<8x1xf32> -> vector<8x1xf32>
    %49 = vector.broadcast %48 : vector<8x1xf32> to vector<8x8xf32>
    %50 = arith.mulf %45, %49 : vector<8x8xf32>
    %51 = vector.extract_strided_slice %7 {offsets = [0, 16], sizes = [8, 8], strides = [1, 1]} : vector<8x32xf32> to vector<8x8xf32>
    %cst_13 = arith.constant dense<0.000000e+00> : vector<8x8xf32>
    %52 = tpu.matmul %50, %51, %cst_13 {dimension_numbers = #tpu.dot_dimension_numbers<[1], [0], [0], [1], [0, 0, 1, 1], [], []>} : vector<8x8xf32>, vector<8x8xf32>, vector<8x8xf32> -> vector<8x8xf32>
    %53 = vector.extract_strided_slice %4 {offsets = [0, 24], sizes = [8, 8], strides = [1, 1]} : vector<8x32xf32> to vector<8x8xf32>
    %54 = vector.extract_strided_slice %6 {offsets = [24, 0], sizes = [8, 8], strides = [1, 1]} : vector<32x8xf32> to vector<8x8xf32>
    %cst_14 = arith.constant dense<0.000000e+00> : vector<8x8xf32>
    %55 = tpu.matmul %53, %54, %cst_14 {dimension_numbers = #tpu.dot_dimension_numbers<[1], [0], [0], [1], [0, 0, 1, 1], [], []>} : vector<8x8xf32>, vector<8x8xf32>, vector<8x8xf32> -> vector<8x8xf32>
    %cst_15 = arith.constant dense<0xFF800000> : vector<8xf32>
    %56 = vector.multi_reduction <maximumf>, %55, %cst_15 [1] : vector<8x8xf32> to vector<8xf32>
    %57 = vector.shape_cast %56 : vector<8xf32> to vector<8x1xf32>
    %58 = vector.broadcast %57 : vector<8x1xf32> to vector<8x8xf32>
    %59 = arith.subf %55, %58 : vector<8x8xf32>
    %60 = math.exp %59 : vector<8x8xf32>
    %cst_16 = arith.constant dense<0.000000e+00> : vector<8xf32>
    %61 = vector.multi_reduction <add>, %60, %cst_16 [1] : vector<8x8xf32> to vector<8xf32>
    %62 = vector.shape_cast %61 : vector<8xf32> to vector<8x1xf32>
    %63 = tpu.reciprocal %62 {approx = true} : vector<8x1xf32> -> vector<8x1xf32>
    %64 = vector.broadcast %63 : vector<8x1xf32> to vector<8x8xf32>
    %65 = arith.mulf %60, %64 : vector<8x8xf32>
    %66 = vector.extract_strided_slice %7 {offsets = [0, 24], sizes = [8, 8], strides = [1, 1]} : vector<8x32xf32> to vector<8x8xf32>
    %cst_17 = arith.constant dense<0.000000e+00> : vector<8x8xf32>
    %67 = tpu.matmul %65, %66, %cst_17 {dimension_numbers = #tpu.dot_dimension_numbers<[1], [0], [0], [1], [0, 0, 1, 1], [], []>} : vector<8x8xf32>, vector<8x8xf32>, vector<8x8xf32> -> vector<8x8xf32>
    %68 = tpu.concatenate %22, %37, %52, %67 in 1 : vector<8x8xf32>, vector<8x8xf32>, vector<8x8xf32>, vector<8x8xf32> -> vector<8x32xf32>
    %c0_18 = arith.constant 0 : index
    %c0_19 = arith.constant 0 : index
    %c0_20 = arith.constant 0 : index
    %69 = vector.load %arg2[%c0_18, %c0_19, %c0_20] : memref<1x8x32xf32, #tpu.memory_space<vmem>>, vector<1x8x32xf32>
    %70 = vector.shape_cast %69 : vector<1x8x32xf32> to vector<8x32xf32>
    %71 = vector.shape_cast %68 : vector<8x32xf32> to vector<1x8x32xf32>
    tpu.vector_store %arg2[%c0_18, %c0_19, %c0_20], %71 {strides = array<i32>} : memref<1x8x32xf32, #tpu.memory_space<vmem>>, vector<1x8x32xf32>,
    return
  }
  func.func @transform_0(%arg0: i32) -> (i32, i32, i32) {
    %c0_i32 = arith.constant 0 : i32
    %c0_i32_0 = arith.constant 0 : i32
    %c0_i32_1 = arith.constant 0 : i32
    return %arg0, %c0_i32, %c0_i32_0 : i32, i32, i32
  }
  func.func @transform_1(%arg0: i32) -> (i32, i32, i32) {
    %c0_i32 = arith.constant 0 : i32
    %c0_i32_0 = arith.constant 0 : i32
    %c0_i32_1 = arith.constant 0 : i32
    return %arg0, %c0_i32, %c0_i32_0 : i32, i32, i32
  }
}

module attributes {stable_mosaic.version = 11 : i64} {
  func.func @_ffn_block_kernel(%arg0: i32, %arg1: memref<8x32xf32, #tpu.memory_space<vmem>>, %arg2: memref<1x32xf32, #tpu.memory_space<vmem>>, %arg3: memref<1x32xf32, #tpu.memory_space<vmem>>, %arg4: memref<32x64xf32, #tpu.memory_space<vmem>>, %arg5: memref<1x64xf32, #tpu.memory_space<vmem>>, %arg6: memref<64x32xf32, #tpu.memory_space<vmem>>, %arg7: memref<1x32xf32, #tpu.memory_space<vmem>>, %arg8: memref<1x32xf32, #tpu.memory_space<vmem>>, %arg9: memref<1x32xf32, #tpu.memory_space<vmem>>, %arg10: memref<8x32xf32, #tpu.memory_space<vmem>>) attributes {dimension_semantics = [#tpu.dimension_semantics<parallel>], iteration_bounds = array<i64: 2>, scalar_prefetch = 0 : i64, scratch_operands = 0 : i64, tpu.core_type = #tpu.core_type<tc>, window_params = [{transform_indices = @transform_0, window_bounds = array<i64: 8, 32>}, {pipeline_mode = #tpu.pipeline_mode<synchronous>, transform_indices = @transform_1, window_bounds = array<i64: 1, 32>}, {pipeline_mode = #tpu.pipeline_mode<synchronous>, transform_indices = @transform_2, window_bounds = array<i64: 1, 32>}, {pipeline_mode = #tpu.pipeline_mode<synchronous>, transform_indices = @transform_3, window_bounds = array<i64: 32, 64>}, {pipeline_mode = #tpu.pipeline_mode<synchronous>, transform_indices = @transform_4, window_bounds = array<i64: 1, 64>}, {pipeline_mode = #tpu.pipeline_mode<synchronous>, transform_indices = @transform_5, window_bounds = array<i64: 64, 32>}, {pipeline_mode = #tpu.pipeline_mode<synchronous>, transform_indices = @transform_6, window_bounds = array<i64: 1, 32>}, {pipeline_mode = #tpu.pipeline_mode<synchronous>, transform_indices = @transform_7, window_bounds = array<i64: 1, 32>}, {pipeline_mode = #tpu.pipeline_mode<synchronous>, transform_indices = @transform_8, window_bounds = array<i64: 1, 32>}, {transform_indices = @transform_9, window_bounds = array<i64: 8, 32>}]} {
    %c0 = arith.constant 0 : index
    %c0_0 = arith.constant 0 : index
    %0 = vector.load %arg1[%c0, %c0_0] : memref<8x32xf32, #tpu.memory_space<vmem>>, vector<8x32xf32>
    %c0_1 = arith.constant 0 : index
    %c0_2 = arith.constant 0 : index
    %1 = vector.load %arg2[%c0_1, %c0_2] : memref<1x32xf32, #tpu.memory_space<vmem>>, vector<1x32xf32>
    %c0_3 = arith.constant 0 : index
    %c0_4 = arith.constant 0 : index
    %2 = vector.load %arg3[%c0_3, %c0_4] : memref<1x32xf32, #tpu.memory_space<vmem>>, vector<1x32xf32>
    %cst = arith.constant dense<0.000000e+00> : vector<8xf32>
    %3 = vector.multi_reduction <add>, %0, %cst [1] : vector<8x32xf32> to vector<8xf32>
    %4 = vector.shape_cast %3 : vector<8xf32> to vector<8x1xf32>
    %cst_5 = arith.constant 3.200000e+01 : f32
    %5 = vector.broadcast %cst_5 : f32 to vector<8x1xf32>
    %6 = arith.divf %4, %5 : vector<8x1xf32>
    %7 = vector.broadcast %6 : vector<8x1xf32> to vector<8x32xf32>
    %8 = arith.subf %0, %7 : vector<8x32xf32>
    %9 = arith.mulf %8, %8 : vector<8x32xf32>
    %cst_6 = arith.constant dense<0.000000e+00> : vector<8xf32>
    %10 = vector.multi_reduction <add>, %9, %cst_6 [1] : vector<8x32xf32> to vector<8xf32>
    %11 = vector.shape_cast %10 : vector<8xf32> to vector<8x1xf32>
    %cst_7 = arith.constant 3.200000e+01 : f32
    %12 = vector.broadcast %cst_7 : f32 to vector<8x1xf32>
    %13 = arith.divf %11, %12 : vector<8x1xf32>
    %cst_8 = arith.constant 9.99999997E-7 : f32
    %14 = vector.broadcast %cst_8 : f32 to vector<8x1xf32>
    %15 = arith.addf %13, %14 : vector<8x1xf32>
    %16 = math.rsqrt %15 : vector<8x1xf32>
    %17 = vector.broadcast %16 : vector<8x1xf32> to vector<8x32xf32>
    %18 = arith.mulf %8, %17 : vector<8x32xf32>
    %19 = vector.broadcast %1 : vector<1x32xf32> to vector<8x32xf32>
    %20 = arith.mulf %18, %19 : vector<8x32xf32>
    %21 = vector.broadcast %2 : vector<1x32xf32> to vector<8x32xf32>
    %22 = arith.addf %20, %21 : vector<8x32xf32>
    %c0_9 = arith.constant 0 : index
    %c0_10 = arith.constant 0 : index
    %23 = vector.load %arg4[%c0_9, %c0_10] : memref<32x64xf32, #tpu.memory_space<vmem>>, vector<32x64xf32>
    %cst_11 = arith.constant dense<0.000000e+00> : vector<8x64xf32>
    %24 = tpu.matmul %22, %23, %cst_11 {dimension_numbers = #tpu.dot_dimension_numbers<[1], [0], [0], [1], [0, 0, 1, 1], [], []>} : vector<8x32xf32>, vector<32x64xf32>, vector<8x64xf32> -> vector<8x64xf32>
    %c0_12 = arith.constant 0 : index
    %c0_13 = arith.constant 0 : index
    %25 = vector.load %arg5[%c0_12, %c0_13] : memref<1x64xf32, #tpu.memory_space<vmem>>, vector<1x64xf32>
    %26 = vector.broadcast %25 : vector<1x64xf32> to vector<8x64xf32>
    %27 = arith.addf %24, %26 : vector<8x64xf32>
    %cst_14 = arith.constant 0.000000e+00 : f32
    %28 = vector.broadcast %cst_14 : f32 to vector<8x64xf32>
    %29 = arith.maximumf %27, %28 : vector<8x64xf32>
    %c0_15 = arith.constant 0 : index
    %c0_16 = arith.constant 0 : index
    %30 = vector.load %arg6[%c0_15, %c0_16] : memref<64x32xf32, #tpu.memory_space<vmem>>, vector<64x32xf32>
    %cst_17 = arith.constant dense<0.000000e+00> : vector<8x32xf32>
    %31 = tpu.matmul %29, %30, %cst_17 {dimension_numbers = #tpu.dot_dimension_numbers<[1], [0], [0], [1], [0, 0, 1, 1], [], []>} : vector<8x64xf32>, vector<64x32xf32>, vector<8x32xf32> -> vector<8x32xf32>
    %c0_18 = arith.constant 0 : index
    %c0_19 = arith.constant 0 : index
    %32 = vector.load %arg7[%c0_18, %c0_19] : memref<1x32xf32, #tpu.memory_space<vmem>>, vector<1x32xf32>
    %33 = vector.broadcast %32 : vector<1x32xf32> to vector<8x32xf32>
    %34 = arith.addf %31, %33 : vector<8x32xf32>
    %35 = arith.addf %34, %0 : vector<8x32xf32>
    %c0_20 = arith.constant 0 : index
    %c0_21 = arith.constant 0 : index
    %36 = vector.load %arg8[%c0_20, %c0_21] : memref<1x32xf32, #tpu.memory_space<vmem>>, vector<1x32xf32>
    %c0_22 = arith.constant 0 : index
    %c0_23 = arith.constant 0 : index
    %37 = vector.load %arg9[%c0_22, %c0_23] : memref<1x32xf32, #tpu.memory_space<vmem>>, vector<1x32xf32>
    %cst_24 = arith.constant dense<0.000000e+00> : vector<8xf32>
    %38 = vector.multi_reduction <add>, %35, %cst_24 [1] : vector<8x32xf32> to vector<8xf32>
    %39 = vector.shape_cast %38 : vector<8xf32> to vector<8x1xf32>
    %cst_25 = arith.constant 3.200000e+01 : f32
    %40 = vector.broadcast %cst_25 : f32 to vector<8x1xf32>
    %41 = arith.divf %39, %40 : vector<8x1xf32>
    %42 = vector.broadcast %41 : vector<8x1xf32> to vector<8x32xf32>
    %43 = arith.subf %35, %42 : vector<8x32xf32>
    %44 = arith.mulf %43, %43 : vector<8x32xf32>
    %cst_26 = arith.constant dense<0.000000e+00> : vector<8xf32>
    %45 = vector.multi_reduction <add>, %44, %cst_26 [1] : vector<8x32xf32> to vector<8xf32>
    %46 = vector.shape_cast %45 : vector<8xf32> to vector<8x1xf32>
    %cst_27 = arith.constant 3.200000e+01 : f32
    %47 = vector.broadcast %cst_27 : f32 to vector<8x1xf32>
    %48 = arith.divf %46, %47 : vector<8x1xf32>
    %cst_28 = arith.constant 9.99999974E-6 : f32
    %49 = vector.broadcast %cst_28 : f32 to vector<8x1xf32>
    %50 = arith.addf %48, %49 : vector<8x1xf32>
    %51 = math.rsqrt %50 : vector<8x1xf32>
    %52 = vector.broadcast %51 : vector<8x1xf32> to vector<8x32xf32>
    %53 = arith.mulf %43, %52 : vector<8x32xf32>
    %54 = vector.broadcast %36 : vector<1x32xf32> to vector<8x32xf32>
    %55 = arith.mulf %53, %54 : vector<8x32xf32>
    %56 = vector.broadcast %37 : vector<1x32xf32> to vector<8x32xf32>
    %57 = arith.addf %55, %56 : vector<8x32xf32>
    %cst_29 = arith.constant 0.000000e+00 : f32
    %58 = vector.broadcast %cst_29 : f32 to vector<8x32xf32>
    %59 = arith.maximumf %57, %58 : vector<8x32xf32>
    %c0_30 = arith.constant 0 : index
    %c0_31 = arith.constant 0 : index
    %60 = vector.load %arg10[%c0_30, %c0_31] : memref<8x32xf32, #tpu.memory_space<vmem>>, vector<8x32xf32>
    tpu.vector_store %arg10[%c0_30, %c0_31], %59 {strides = array<i32>} : memref<8x32xf32, #tpu.memory_space<vmem>>, vector<8x32xf32>,
    return
  }
  func.func @transform_0(%arg0: i32) -> (i32, i32) {
    %c0_i32 = arith.constant 0 : i32
    %c0_i32_0 = arith.constant 0 : i32
    return %arg0, %c0_i32 : i32, i32
  }
  func.func @transform_1(%arg0: i32) -> (i32, i32) {
    %c0_i32 = arith.constant 0 : i32
    %c0_i32_0 = arith.constant 0 : i32
    %c0_i32_1 = arith.constant 0 : i32
    return %c0_i32, %c0_i32_0 : i32, i32
  }
  func.func @transform_2(%arg0: i32) -> (i32, i32) {
    %c0_i32 = arith.constant 0 : i32
    %c0_i32_0 = arith.constant 0 : i32
    %c0_i32_1 = arith.constant 0 : i32
    return %c0_i32, %c0_i32_0 : i32, i32
  }
  func.func @transform_3(%arg0: i32) -> (i32, i32) {
    %c0_i32 = arith.constant 0 : i32
    %c0_i32_0 = arith.constant 0 : i32
    %c0_i32_1 = arith.constant 0 : i32
    return %c0_i32, %c0_i32_0 : i32, i32
  }
  func.func @transform_4(%arg0: i32) -> (i32, i32) {
    %c0_i32 = arith.constant 0 : i32
    %c0_i32_0 = arith.constant 0 : i32
    %c0_i32_1 = arith.constant 0 : i32
    return %c0_i32, %c0_i32_0 : i32, i32
  }
  func.func @transform_5(%arg0: i32) -> (i32, i32) {
    %c0_i32 = arith.constant 0 : i32
    %c0_i32_0 = arith.constant 0 : i32
    %c0_i32_1 = arith.constant 0 : i32
    return %c0_i32, %c0_i32_0 : i32, i32
  }
  func.func @transform_6(%arg0: i32) -> (i32, i32) {
    %c0_i32 = arith.constant 0 : i32
    %c0_i32_0 = arith.constant 0 : i32
    %c0_i32_1 = arith.constant 0 : i32
    return %c0_i32, %c0_i32_0 : i32, i32
  }
  func.func @transform_7(%arg0: i32) -> (i32, i32) {
    %c0_i32 = arith.constant 0 : i32
    %c0_i32_0 = arith.constant 0 : i32
    %c0_i32_1 = arith.constant 0 : i32
    return %c0_i32, %c0_i32_0 : i32, i32
  }
  func.func @transform_8(%arg0: i32) -> (i32, i32) {
    %c0_i32 = arith.constant 0 : i32
    %c0_i32_0 = arith.constant 0 : i32
    %c0_i32_1 = arith.constant 0 : i32
    return %c0_i32, %c0_i32_0 : i32, i32
  }
  func.func @transform_9(%arg0: i32) -> (i32, i32) {
    %c0_i32 = arith.constant 0 : i32
    %c0_i32_0 = arith.constant 0 : i32
    return %arg0, %c0_i32 : i32, i32
  }
}

</mosaic_0001>

<bundles_post_ra>
// kernel: tpu_custom_call.1
= control target key start
LH: loop header
LB: loop body
LE: loop exit
PB: predicated region body
PF: predicated region fallthrough
CT: control target
= control target key end

     0   :  { %7 = vsyncpa [#allocation3], 0  ;;  %s633_s0 = inlined_call_operand.hbm [shape: f32[16,128], index: 0, kind: input, shape index: {}]   ;;  %s634_s1 = inlined_call_operand.hbm [shape: f32[8,128], index: 1, kind: input, shape index: {}]   ;;  %s635_s2 = inlined_call_operand.hbm [shape: f32[16,128], index: 2, kind: output, shape index: {}]  }
   0x1   :  { %9 = vsyncpa [#allocation3 + $0x1], 0 }
   0x2   :  { %10 = vsyncpa [#allocation6], 0 }
   0x3   :  { %11 = vsyncpa [#allocation4], 0 }
   0x4   :  { %13 = vsyncpa [#allocation4 + $0x1], 0  ;;  %s495_s9 = smov 0   ;;  %s497_s10 = smov 0  }
   0x5   :  { %s499_s11 = smov 0   ;;  %s501_s12 = smov 0  }
   0x6 LB: > { %s516_s13 = sadd.s32 4294967295, %s477_s12   ;;  %s276_s14 = sadd.s32 4294967294, %s477_s12   ;;  %s477_s12 = sphi %s501_s12, %s645_s12   ;;  %s473_s11 = sphi %s499_s11, %s644_s11   ;;  %s469_s10 = sphi %s497_s10, %s643_s10   ;;  %s465_s9 = sphi %s495_s9, %s642_s9  }
   0x7   : > { %p39_p0 = scmp.ne.s32.totalorder %s469_s10, %s465_s9  ;;  %p40_p1 = scmp.eq.s32.totalorder %s516_s13, 0 }
   0x8   : > { %p84_p2 = scmp.eq.s32.totalorder %s516_s13, 1  ;;  %p90_p3 = scmp.eq.s32.totalorder %s276_s14, 1 }
   0x9   : > { %p525_p4 = por %p40_p1, %p39_p0  ;;  %p277_p5 = scmp.ge.s32.totalorder %s477_s12, 1 }
   0xa   : > { %p530_p6 = por %p90_p3, %p39_p0  ;;  %p97_p7 = scmp.lt.s32.totalorder %s477_s12, 3 }
   0xb   : > { %s109_s19 = sshll.u32 %s634_s1, 4  ;;  %s479_s21 = smov [#allocation5]   ;;  %s110_s19 = int_to_ptr.hbm [resolvable:$true] %s109_s19 }
   0xc   : > { %p538_p8 = pnand %p277_p5, %p97_p7  ;;  %s111_s22 = sshll.u32 %s479_s21, 4  ;;  %s112_s22 = int_to_ptr.vmem [resolvable:$true] %s111_s22 }
   0xd   : > { %s548_s23 = sadd.s32 1, %s477_s12   ;;  %s26_s24 = sadd.s32 1, %s473_s11 }
   0xe   : > { %p298_p10 = pneg %p538_p8  ;;  %s23_s25 = ssub.s32 %s477_s12, %s548_s23 }
   0xf   : > { %p24_p12 = scmp.eq.s32.totalorder %s23_s25, 0  ;;  %p33_p13 = scmp.ne.s32.totalorder %s473_s11, %s469_s10 }
  0x10   : > { %p299_p11 = pnand %p298_p10, %p40_p1  ;;  %p34_p0 = scmp.eq.s32.totalorder %s477_s12, 0 }
  0x11   : > { %s557_s26 = scalar_select %p24_p12, %s473_s11, %s26_s24  }
  0x12   : > { %301 = dma.hbm_to_vmem [thread:$0]  (!%p299_p11), %s110_s19, 128, %s112_s22, [#allocation6]  }
  0x13   : > { %p561_p3 = por %p84_p2, %p33_p13  ;;  %p311_p5 = scmp.lt.s32.totalorder %s477_s12, 2 }
  0x14   : > { %s122_s28 = sand.u32 1, %s473_s11   ;;  %s281_s29 = sshll.u32 %s477_s12, 3 }
  0x15   : > { %p35_p7 = por %p34_p0, %p33_p13  ;;  %s280_s30 = sshll.u32 %s122_s28, 3 }
  0x16   : > { %s130_s5 = scalar_lea.hbm %s633_s0, %s281_s29  ;;  %s126_s7 = scalar_lea.vmem [#allocation2], %s280_s30 }
  0x17   : > { %s132_s6 = sshll.u32 %s130_s5, 4  ;;  %s134_s8 = sshll.u32 %s126_s7, 4  ;;  %s133_s6 = int_to_ptr.hbm [resolvable:$true] %s132_s6  ;;  %s135_s8 = int_to_ptr.vmem [resolvable:$true] %s134_s8 }
  0x18   : > { %p571_p10 = pnand %p311_p5, %p35_p7  ;;  %s123_s17 = scalar_lea.sflag [#allocation3], %s122_s28 }
  0x19   : > { %s377_s18 = sshra.s32 %s133_s6, 4  ;;  %s384_s24 = scalar_lea.hbm %s633_s0, 16  ;;  %s378_s18 = int_to_ptr.hbm [resolvable:$true] %s377_s18 }
  0x1a   : > { %s379_s19 = scalar_lea.hbm %s378_s18, 8  ;;  %p381_p11 = pneg %p571_p10 }
  0x1b   : > { %p380_p2 = scmp.ne.s32.totalorder %s378_s18, %s379_s19  ;;  %p385_p0 = scmp.lt.s32.totalorder %s378_s18, %s633_s0 }
  0x1c   : > { %p386_p5 = scmp.lt.s32.totalorder %s384_s24, %s379_s19 }
  0x1d   : > { %p382_p12 = pnand %p381_p11, %p380_p2 }
  0x1e   : > { %p387_p7 = por %p386_p5, %p385_p0 }
  0x1f   : > { %p383_p13 = pneg %p382_p12 }
  0x21   : > { %p388_p9 = pnand %p387_p7, %p383_p13 }
  0x23   : > { %391 = shalt.err (!%p388_p9)
}
  0x24   : > { %305 = dma.hbm_to_vmem [thread:$0]  (!%p571_p10), %s133_s6, 128, %s135_s8, %s123_s17  }
  0x25   : > { %143 = sbr.rel (%p538_p8) target bundleno = 60 (0x3c), region = 28  ;;  %s588_s28 = sand.u32 (!%p538_p8), 1, %s469_s10  }
  0x26   : > { %s283_s30 = sshll.u32 (!%p538_p8), %s588_s28, 3  ;;  %s146_s3 = scalar_lea.sflag (!%p538_p8), [#allocation3], %s588_s28 }
  0x27   : > { %s149_s4 = scalar_lea.vmem (!%p538_p8), [#allocation2], %s283_s30 }
  0x2a   : > { %452 = dma.done.wait (%p525_p4), %s146_s3, 128  }
  0x2b   : > { %454 = vsyncadd (%p525_p4), %s146_s3, 4294967168 }
  0x2c   : > { %456 = dma.done.wait (%p40_p1), [#allocation6], 128  }
  0x2d   : > { %458 = vsyncadd (%p40_p1), [#allocation6], 4294967168  ;;  %s287_s20 = sshll.u32 %s516_s13, 3  ;;  %s175_s8 = scalar_lea.vmem [#allocation7], %s283_s30  ;;  %v176_v0 = vld [vmem:[%s149_s4] sm:$0xff]  ;;  %v177_v1 = vld [vmem:[#allocation5] sm:$0xff] }
  0x2e   : > { %s191_s7 = scalar_lea.hbm %s635_s2, %s287_s20  ;;  %s193_s14 = sshll.u32 %s175_s8, 4  ;;  %v178_v2 = vadd.f32 %v177_v1, %v176_v0  ;;  %s194_s14 = int_to_ptr.vmem [resolvable:$true] %s193_s14 }
  0x2f   : > { %s195_s17 = sshll.u32 %s191_s7, 4  ;;  %s181_s15 = scalar_lea.sflag [#allocation4], %s588_s28  ;;  %s196_s17 = int_to_ptr.hbm [resolvable:$true] %s195_s17 }
  0x30   : > { %179 = vst [vmem:[%s175_s8] sm:$0xff] %v178_v2  ;;  %s421_s18 = sshra.s32 %s196_s17, 4  ;;  %s427_s22 = scalar_lea.hbm %s635_s2, 16  ;;  %s422_s18 = int_to_ptr.hbm [resolvable:$true] %s421_s18 }
  0x31   : > { %s423_s19 = scalar_lea.hbm %s422_s18, 8  ;;  %p428_p9 = scmp.lt.s32.totalorder %s422_s18, %s635_s2 }
  0x32   : > { %p424_p1 = scmp.ne.s32.totalorder %s422_s18, %s423_s19  ;;  %p429_p10 = scmp.lt.s32.totalorder %s427_s22, %s423_s19 }
  0x34   : > { %p425_p4 = pnand %p424_p1, %p561_p3  ;;  %p430_p2 = por %p429_p10, %p428_p9 }
  0x36   : > { %p426_p8 = pneg %p425_p4 }
  0x38   : > { %p431_p11 = pnand %p430_p2, %p426_p8 }
  0x3a   : > { %434 = shalt.err (!%p431_p11)
}
  0x3b   : > { %296 = dma.vmem_to_hbm [thread:$0]  (%p561_p3), %s194_s14, 128, %s196_s17, %s181_s15  }
  0x3c PF: > { %s207_s29 = sand.u32 1, %s465_s9   ;;  %p641_p12 = scmp.ge.s32.totalorder %s477_s12, 2 }
  0x3d   : > { %s208_s28 = scalar_lea.sflag [#allocation4], %s207_s29 }
  0x3e   : > { %p307_p13 = pnand %p641_p12, %p530_p6 }
  0x40   : > { %p308_p0 = pneg %p307_p13 }
  0x42   : > { %460 = dma.done.wait (%p308_p0), %s208_s28, 128  }
  0x43   : > { %462 = vsyncadd (%p308_p0), %s208_s28, 4294967168  ;;  %p16_p5 = scmp.ge.s32.totalorder %s548_s23, 4   ;;  %s642_s9 = smov %s469_s10 }
  0x44   : > { %s643_s10 = smov %s473_s11  ;;  %s644_s11 = smov %s557_s26 }
  0x45   : > { %s645_s12 = smov %s548_s23  ;;  %18 = sbr.rel (!%p16_p5) target bundleno = 6 (0x6), region = 77 }
  0x4a   :  { %214 = vsyncpa [#allocation3], 1 }
  0x4b   :  { %216 = vsyncpa [#allocation3 + $0x1], 1 }
  0x4c   :  { %217 = vsyncpa [#allocation6], 1 }
  0x4d   :  { %218 = vsyncpa [#allocation4], 1 }
  0x4e   :  { %220 = vsyncpa [#allocation4 + $0x1], 1 }

// kernel: transformer_encoder_forward.4
= control target key start
LH: loop header
LB: loop body
LE: loop exit
PB: predicated region body
PF: predicated region fallthrough
CT: control target
= control target key end

     0   :  { %8 = vsyncpa [#allocation3], 0  ;;  %s679_s0 = inlined_call_operand.hbm [shape: f32[16,32], index: 0, kind: input, shape index: {}]   ;;  %s680_s1 = inlined_call_operand.hbm [shape: f32[32,96], index: 1, kind: input, shape index: {}]   ;;  %s681_s2 = inlined_call_operand.hbm [shape: f32[1,96], index: 2, kind: input, shape index: {}]   ;;  %s682_s3 = inlined_call_operand.vmem [shape: f32[16,96], index: 3, kind: output, shape index: {}]  }
   0x1   :  { %10 = vsyncpa [#allocation3 + $0x1], 0 }
   0x2   :  { %11 = vsyncpa [#allocation5], 0  ;;  %s570_s12 = smov 0   ;;  %s572_s13 = smov 0  }
   0x3   :  { %s574_s14 = smov 0   ;;  %s576_s15 = smov 0  }
   0x4 LB: > { %s127_s18 = sshll.u32 %s680_s1, 4  ;;  %s594_s19 = sadd.s32 4294967295, %s544_s15   ;;  %s544_s15 = sphi %s576_s15, %s689_s15   ;;  %s540_s14 = sphi %s574_s14, %s688_s14   ;;  %s536_s13 = sphi %s572_s13, %s687_s13   ;;  %s532_s12 = sphi %s570_s12, %s686_s12   ;;  %s128_s18 = int_to_ptr.hbm [resolvable:$true] %s127_s18 }
   0x5   : > { %p339_p0 = scmp.ge.s32.totalorder %s544_s15, 1  ;;  %p38_p1 = scmp.eq.s32.totalorder %s594_s19, 0 }
   0x6   : > { %p116_p2 = scmp.lt.s32.totalorder %s544_s15, 3  ;;  %s546_s21 = smov [#allocation4]  }
   0x7   : > { %s129_s22 = sshll.u32 %s546_s21, 4  ;;  %s142_s25 = sshll.u32 %s681_s2, 4  ;;  %s130_s22 = int_to_ptr.vmem [resolvable:$true] %s129_s22  ;;  %s143_s25 = int_to_ptr.hbm [resolvable:$true] %s142_s25 }
   0x8   : > { %p599_p3 = pnand %p339_p0, %p116_p2  ;;  %s547_s26 = smov [#allocation6]  }
   0x9   : > { %s144_s27 = sshll.u32 %s547_s26, 4  ;;  %s548_s28 = smov 128   ;;  %s145_s27 = int_to_ptr.vmem [resolvable:$true] %s144_s27 }
   0xa   : > { %p363_p4 = pneg %p599_p3  ;;  %s549_s29 = smov 8  }
   0xb   : > { %s611_s30 = sadd.s32 1, %s544_s15   ;;  %s24_s5 = sadd.s32 1, %s540_s14 }
   0xc   : > { %p364_p5 = pnand %p363_p4, %p38_p1  ;;  %s21_s4 = ssub.s32 %s544_s15, %s611_s30 }
   0xd   : > { %p22_p6 = scmp.eq.s32.totalorder %s21_s4, 0  ;;  %p31_p7 = scmp.ne.s32.totalorder %s540_s14, %s536_s13 }
   0xe   : > { %366 = dma.hbm_to_vmem [thread:$0]  (!%p364_p5), %s128_s18, 512, %s130_s22, [#allocation5], %s548_s28, %s548_s28, %s549_s29  }
   0xf   : > { %369 = dma.hbm_to_vmem [thread:$0]  (!%p364_p5), %s143_s25, 16, %s145_s27, [#allocation5]  }
  0x10   : > { %p32_p8 = scmp.eq.s32.totalorder %s544_s15, 0  ;;  %p37_p9 = scmp.ne.s32.totalorder %s536_s13, %s532_s12 }
  0x11   : > { %s622_s6 = scalar_select %p22_p6, %s540_s14, %s24_s5  }
  0x12   : > { %p626_p10 = por %p38_p1, %p37_p9  ;;  %p376_p11 = scmp.lt.s32.totalorder %s544_s15, 2 }
  0x13   : > { %s155_s8 = sand.u32 1, %s540_s14   ;;  %s344_s9 = sshll.u32 %s544_s15, 3 }
  0x14   : > { %p33_p12 = por %p32_p8, %p31_p7  ;;  %s343_s10 = sshll.u32 %s155_s8, 3 }
  0x15   : > { %s163_s17 = scalar_lea.hbm %s679_s0, %s344_s9  ;;  %s159_s21 = scalar_lea.vmem [#allocation2], %s343_s10 }
  0x16   : > { %s165_s18 = sshll.u32 %s163_s17, 4  ;;  %s167_s22 = sshll.u32 %s159_s21, 4  ;;  %s166_s18 = int_to_ptr.hbm [resolvable:$true] %s165_s18  ;;  %s168_s22 = int_to_ptr.vmem [resolvable:$true] %s167_s22 }
  0x17   : > { %p636_p13 = pnand %p376_p11, %p33_p12  ;;  %s156_s23 = scalar_lea.sflag [#allocation3], %s155_s8 }
  0x18   : > { %s476_s24 = sshra.s32 %s166_s18, 4  ;;  %s483_s27 = scalar_lea.hbm %s679_s0, 16  ;;  %s477_s24 = int_to_ptr.hbm [resolvable:$true] %s476_s24 }
  0x19   : > { %s478_s15 = scalar_lea.hbm %s477_s24, 8  ;;  %p480_p2 = pneg %p636_p13 }
  0x1a   : > { %p479_p0 = scmp.ne.s32.totalorder %s477_s24, %s478_s15  ;;  %p484_p6 = scmp.lt.s32.totalorder %s477_s24, %s679_s0 }
  0x1b   : > { %p485_p7 = scmp.lt.s32.totalorder %s483_s27, %s478_s15 }
  0x1c   : > { %p481_p4 = pnand %p480_p2, %p479_p0 }
  0x1d   : > { %p486_p8 = por %p485_p7, %p484_p6 }
  0x1e   : > { %p482_p5 = pneg %p481_p4 }
  0x20   : > { %p487_p9 = pnand %p486_p8, %p482_p5 }
  0x22   : > { %490 = shalt.err (!%p487_p9)
}
  0x23   : > { %373 = dma.hbm_to_vmem [thread:$0]  (!%p636_p13), %s166_s18, 128, %s168_s22, %s156_s23  }
  0x24   : > { %176 = sbr.rel (%p599_p3) target bundleno = 181 (0xb5), region = 32  ;;  %s178_s4 = sand.u32 (!%p599_p3), 1, %s536_s13  }
  0x25   : > { %s346_s5 = sshll.u32 (!%p599_p3), %s178_s4, 3  ;;  %s179_s8 = scalar_lea.sflag (!%p599_p3), [#allocation3], %s178_s4 }
  0x26   : > { %s182_s9 = scalar_lea.vmem (!%p599_p3), [#allocation2], %s346_s5 }
  0x29   : > { %523 = dma.done.wait (%p626_p10), %s179_s8, 128  }
  0x2a   : > { %525 = vsyncadd (%p626_p10), %s179_s8, 4294967168 }
  0x2b   : > { %527 = dma.done.wait (%p38_p1), [#allocation5], 528  }
  0x2c   : > { %529 = vsyncadd (%p38_p1), [#allocation5], 4294966768  ;;  %v223_v0 = vld [vmem:[#allocation4 + $0x18] sm:$0xff]  ;;  %v222_v1 = vld [vmem:[#allocation4 + $0x10] sm:$0xff]  ;;  %vm228_vm0 = vcmask 261120   ;;  %p215_p3 = scmp.lt.s32.totalorder %s594_s19, 1 }
  0x2d   : > { %244 = vmatpush.msra.mxu0 %v223_v0  ;;  %v221_v2 = vld [vmem:[#allocation4 + $0x8] sm:$0xff]  ;;  %v220_v3 = vld [vmem:[#allocation4] sm:$0xff]  ;;  %v219_v4 = vld [vmem:[%s182_s9] sm:$0xff]  ;;  %vm252_vm1 = vcmask 785408  }
  0x2e   : > { %s691_s19 = smov (!%p215_p3, %s594_s19), 1  ;;  %v415_v5 = vld [vmem:[#allocation6] ss:$0 sm:$0xff] }
  0x2f   : > { %245 = vmatpush.msra.mxu0 %v222_v1  ;;  %s349_s20 = sshll.u32 %s691_s19, 3 }
  0x30   : > { %s218_s11 = scalar_lea.vmem %s682_s3, %s349_s20 }
  0x31   : > { %246 = vmatpush.msra.mxu0 %v221_v2 }
  0x33   : > { %247 = vmatpush.msra.mxu0 %v220_v3 }
  0x34   : > { %350 = vmatmul.msk.f32.vlgmr.msra.gmra.mxu0 %vm228_vm0, %v219_v4 }
  0xb1   : > { %v249_v6 = vpop.f32.mrf.mxu0 }
  0xb2   : > { %v250_v7 = vadd.f32 %v415_v5, %v249_v6 }
  0xb4   : > { %253 = vst.msk [vmem:[%s218_s11] sm:$0xff] %vm252_vm1, %v250_v7 }
  0xb5 PF: > { %p14_p1 = scmp.ge.s32.totalorder %s611_s30, 4   ;;  %s686_s12 = smov %s536_s13 }
  0xb6   : > { %s687_s13 = smov %s540_s14  ;;  %s688_s14 = smov %s622_s6 }
  0xb7   : > { %s689_s15 = smov %s611_s30  ;;  %16 = sbr.rel (!%p14_p1) target bundleno = 4 (0x4), region = 80 }
  0xbc   :  { %273 = vsyncpa [#allocation3], 1 }
  0xbd   :  { %275 = vsyncpa [#allocation3 + $0x1], 1 }
  0xbe   :  { %276 = vsyncpa [#allocation5], 1 }

// kernel: transformer_encoder_forward.6
= control target key start
LH: loop header
LB: loop body
LE: loop exit
PB: predicated region body
PF: predicated region fallthrough
CT: control target
= control target key end

     0   :  { %s476_s21 = smov 0   ;;  %s526_s0 = inlined_call_operand.vmem [shape: f32[16,32], index: 0, kind: input, shape index: {}]   ;;  %s527_s1 = inlined_call_operand.vmem [shape: f32[32,32], index: 1, kind: input, shape index: {}]   ;;  %s528_s2 = inlined_call_operand.vmem [shape: f32[1,32], index: 2, kind: input, shape index: {}]   ;;  %s529_s3 = inlined_call_operand.vmem [shape: f32[16,32], index: 3, kind: input, shape index: {}]   ;;  %s530_s4 = inlined_call_operand.vmem [shape: f32[1,32], index: 4, kind: input, shape index: {}]   ;;  %s531_s5 = inlined_call_operand.vmem [shape: f32[1,32], index: 5, kind: input, shape index: {}]   ;;  %s532_s6 = inlined_call_operand.vmem [shape: f32[16,32], index: 6, kind: output, shape index: {}]  }
   0x1 LB: > { %s405_s22 = sadd.s32 4294967295, %s438_s21   ;;  %p409_p0 = scmp.ge.s32.totalorder %s438_s21, 1  ;;  %s438_s21 = sphi %s476_s21, %s16_s21  }
   0x2   : > { %p220_p1 = scmp.lt.s32.totalorder %s438_s21, 3 }
   0x4   : > { %p221_p2 = pnand %p409_p0, %p220_p1 }
   0x5   : > { %p252_p3 = scmp.lt.s32.totalorder (!%p221_p2), %s405_s22, 1 }
   0x6   : > { %224 = sbr.rel (%p221_p2) target bundleno = 420 (0x1a4), region = 44 }
   0xb   : > { %v268_v0 = vld [vmem:[%s527_s1 + $0x18] sm:$0xff]  ;;  %v267_v1 = vld [vmem:[%s527_s1 + $0x10] sm:$0xff]  ;;  %v266_v2 = vld [vmem:[%s527_s1 + $0x8] sm:$0xff]  ;;  %s534_s22 = smov (!%p252_p3, %s405_s22), 1  ;;  %vm273_vm0 = vcmask 261120   ;;  %v440_v11 = vmov 32.0  }
   0xc   : > { %289 = vmatpush.msra.mxu0 %v268_v0  ;;  %v265_v3 = vld [vmem:[%s527_s1] sm:$0xff]  ;;  %s496_s7 = sshll.u32 %s534_s22, 3  ;;  %428 = vrcp.f32 %v440_v11 }
   0xd   : > { %s255_s10 = scalar_lea.vmem %s526_s0, %s496_s7  ;;  %v425_v5 = vld [vmem:[%s528_s2] ss:$0 sm:$0xff]  ;;  %s259_s15 = scalar_lea.vmem %s529_s3, %s496_s7 }
   0xe   : > { %290 = vmatpush.msra.mxu0 %v267_v1  ;;  %v264_v4 = vld [vmem:[%s255_s10] sm:$0xff]  ;;  %s263_s23 = scalar_lea.vmem %s532_s6, %s496_s7 }
   0xf   : > { %v297_v7 = vld [vmem:[%s259_s15] sm:$0xff] }
  0x10   : > { %291 = vmatpush.msra.mxu0 %v266_v2  ;;  %v426_v32 = vld [vmem:[%s530_s4] ss:$0 sm:$0xff] }
  0x11   : > { %v427_v34 = vld [vmem:[%s531_s5] ss:$0 sm:$0xff] }
  0x12   : > { %292 = vmatpush.msra.mxu0 %v265_v3  ;;  %v429_v12 = vpop.eup %428 }
  0x13   : > { %413 = vmatmul.msk.f32.vlgmr.msra.gmra.mxu0 %vm273_vm0, %v264_v4  ;;  %v305_v13 = vmul.f32 32.0, %v429_v12  ;;  %vm309_vm1 = vweird.f32 %v429_v12 }
  0x15   : > { %v306_v14 = vsub.f32 1.0, %v305_v13 }
  0x17   : > { %v307_v15 = vmul.f32 %v429_v12, %v306_v14 }
  0x19   : > { %v308_v16 = vadd.f32 %v429_v12, %v307_v15 }
  0x1b   : > { %v310_v17 = vsel %vm309_vm1, %v429_v12, %v308_v16 }
  0x90   : > { %v294_v6 = vpop.f32.mrf.mxu0 }
  0x91   : > { %v295_v8 = vadd.f32 %v425_v5, %v294_v6 }
  0x93   : > { %v298_v9 = vadd.f32 %v297_v7, %v295_v8 }
  0x95   : > { %v301_v10 = vsel %vm273_vm0, %v298_v9, 0.0 }
  0x96   : > { %302 = vadd.xlane.f32.xlu0 %v301_v10 }
 0x109   : > { %v303_v18 = vpop.xlane.xlu0 %302 }
 0x10a   : > { %v311_v19 = vmul.f32 %v310_v17, %v303_v18 }
 0x10c   : > { %v312_v20 = vsub.f32 %v298_v9, %v311_v19 }
 0x10e   : > { %v313_v21 = vmul.f32 %v312_v20, %v312_v20 }
 0x110   : > { %v314_v22 = vsel %vm273_vm0, %v313_v21, 0.0 }
 0x111   : > { %315 = vadd.xlane.f32.xlu0 %v314_v22 }
 0x184   : > { %v316_v23 = vpop.xlane.xlu0 %315 }
 0x185   : > { %v317_v24 = vmul.f32 %v316_v23, %v310_v17 }
 0x187   : > { %v318_v25 = vadd.f32 1e-05, %v317_v24 }
 0x189   : > { %430 = vrsqrt.f32 %v318_v25  ;;  %vm325_vm3 = vweird.f32 %v318_v25 }
 0x18f   : > { %v431_v26 = vpop.eup %430 }
 0x190   : > { %v320_v27 = vmul.f32 %v431_v26, %v318_v25  ;;  %vm326_vm2 = vweird.f32 %v431_v26 }
 0x191   : > { %vm327_vm4 = vmor %vm325_vm3, %vm326_vm2 }
 0x192   : > { %v321_v28 = vmul.f32 %v431_v26, %v320_v27 }
 0x194   : > { %v322_v29 = vmul.f32 0.5, %v321_v28 }
 0x196   : > { %v323_v30 = vsub.f32 1.5, %v322_v29 }
 0x198   : > { %v324_v31 = vmul.f32 %v431_v26, %v323_v30 }
 0x19a   : > { %v328_v33 = vsel %vm327_vm4, %v431_v26, %v324_v31 }
 0x19b   : > { %v329_v35 = vmul.f32 %v328_v33, %v312_v20 }
 0x19d   : > { %v333_v36 = vmul.f32 %v426_v32, %v329_v35 }
 0x19f   : > { %v337_v37 = vadd.f32 %v427_v34, %v333_v36 }
 0x1a1   : > { %v338_v38 = vmax.f32 %v337_v37, 0.0 }
 0x1a3   : > { %339 = vst.msk [vmem:[%s263_s23] sm:$0xff] %vm273_vm0, %v338_v38 }
 0x1a4 PF: > { %s16_s21 = sadd.s32 1, %s438_s21  }
 0x1a5   : > { %p13_p4 = scmp.ge.s32.totalorder %s16_s21, 4  }
 0x1a7   :  { %15 = sbr.rel (!%p13_p4) target bundleno = 1 (0x1), region = 77 }

// kernel: transformer_encoder_forward.7
= control target key start
LH: loop header
LB: loop body
LE: loop exit
PB: predicated region body
PF: predicated region fallthrough
CT: control target
= control target key end

     0   :  { %14 = vsyncpa [#allocation3], 0  ;;  %s882_s0 = inlined_call_operand.vmem [shape: f32[16,32], index: 0, kind: input, shape index: {}]   ;;  %s883_s1 = inlined_call_operand.vmem [shape: f32[1,32], index: 1, kind: input, shape index: {}]   ;;  %s884_s2 = inlined_call_operand.vmem [shape: f32[1,32], index: 2, kind: input, shape index: {}]   ;;  %s885_s3 = inlined_call_operand.vmem [shape: f32[32,64], index: 3, kind: input, shape index: {}]   ;;  %s886_s4 = inlined_call_operand.vmem [shape: f32[1,64], index: 4, kind: input, shape index: {}]   ;;  %s887_s5 = inlined_call_operand.vmem [shape: f32[64,32], index: 5, kind: input, shape index: {}]   ;;  %s888_s6 = inlined_call_operand.vmem [shape: f32[1,32], index: 6, kind: input, shape index: {}]   ;;  %s889_s7 = inlined_call_operand.vmem [shape: f32[1,32], index: 7, kind: input, shape index: {}]   ;;  %s890_s8 = inlined_call_operand.vmem [shape: f32[1,32], index: 8, kind: input, shape index: {}]   ;;  %s891_s9 = inlined_call_operand.hbm [shape: f32[16,32], index: 9, kind: output, shape index: {}]  }
   0x1   :  { %16 = vsyncpa [#allocation3 + $0x1], 0  ;;  %s726_s30 = smov 0   ;;  %s728_s10 = smov 0  }
   0x2   :  { %s730_s11 = smov 0   ;;  %s732_s12 = smov 0  }
   0x3 LB: > { %s747_s13 = sadd.s32 4294967295, %s673_s12   ;;  %s547_s14 = sadd.s32 4294967294, %s673_s12   ;;  %s673_s12 = sphi %s732_s12, %s897_s12   ;;  %s669_s11 = sphi %s730_s11, %s896_s11   ;;  %s665_s10 = sphi %s728_s10, %s895_s10   ;;  %s661_s30 = sphi %s726_s30, %s894_s30  }
   0x4   : > { %s751_s15 = sadd.s32 1, %s673_s12   ;;  %s223_s16 = sadd.s32 1, %s669_s11 }
   0x5   : > { %s220_s17 = ssub.s32 %s673_s12, %s751_s15  ;;  %p233_p0 = scmp.ne.s32.totalorder %s669_s11, %s665_s10 }
   0x6   : > { %p221_p1 = scmp.eq.s32.totalorder %s220_s17, 0  ;;  %p234_p2 = scmp.eq.s32.totalorder %s747_s13, 1 }
   0x7   : > { %p239_p3 = scmp.ne.s32.totalorder %s665_s10, %s661_s30  ;;  %p240_p4 = scmp.eq.s32.totalorder %s547_s14, 1 }
   0x8   : > { %s762_s18 = scalar_select %p221_p1, %s669_s11, %s223_s16  }
   0x9   : > { %p764_p5 = por %p234_p2, %p233_p0  ;;  %p768_p6 = por %p240_p4, %p239_p3 }
   0xa   : > { %p550_p7 = scmp.ge.s32.totalorder %s673_s12, 1  ;;  %p289_p8 = scmp.lt.s32.totalorder %s673_s12, 3 }
   0xc   : > { %p290_p9 = pnand %p550_p7, %p289_p8 }
   0xd   : > { %p324_p10 = scmp.lt.s32.totalorder (!%p290_p9), %s747_s13, 1  ;;  %s556_s24 = sshll.u32 (!%p290_p9), %s747_s13, 3 }
   0xe   : > { %293 = sbr.rel (%p290_p9) target bundleno = 825 (0x339), region = 56  ;;  %s483_s16 = scalar_lea.hbm (!%p290_p9), %s891_s9, %s556_s24 }
  0x13   : > { %s325_s21 = scalar_select %p324_p10, %s747_s13, 1  ;;  %vm331_vm0 = vcmask 261120   ;;  %v675_v2 = vmov 32.0   ;;  %v372_v14 = vld [vmem:[%s885_s3 + $0x18] sm:$0xff]  ;;  %v371_v15 = vld [vmem:[%s885_s3 + $0x10] sm:$0xff]  ;;  %v370_v16 = vld [vmem:[%s885_s3 + $0x8] sm:$0xff] }
  0x14   : > { %605 = vrcp.f32 %v675_v2  ;;  %392 = vmatpush.msra.mxu0 %v372_v14  ;;  %v369_v17 = vld [vmem:[%s885_s3] sm:$0xff]  ;;  %v408_v18 = vld [vmem:[%s887_s5 + $0x38] sm:$0xff]  ;;  %v407_v19 = vld [vmem:[%s887_s5 + $0x30] sm:$0xff]  ;;  %vm413_vm5 = vcmask 523264   ;;  %s487_s13 = sshll.u32 %s483_s16, 4  ;;  %s488_s13 = int_to_ptr.hbm [resolvable:$true] %s487_s13 }
  0x15   : > { %s552_s22 = sshll.u32 %s325_s21, 3  ;;  %425 = vmatpush.msra.mxu1 %v408_v18  ;;  %v406_v20 = vld [vmem:[%s887_s5 + $0x28] sm:$0xff]  ;;  %v405_v23 = vld [vmem:[%s887_s5 + $0x20] sm:$0xff]  ;;  %v404_v25 = vld [vmem:[%s887_s5 + $0x18] sm:$0xff]  ;;  %s625_s26 = sshra.s32 %s488_s13, 4  ;;  %s626_s26 = int_to_ptr.hbm [resolvable:$true] %s625_s26 }
  0x16   : > { %s327_s25 = scalar_lea.vmem %s882_s0, %s552_s22  ;;  %393 = vmatpush.msra.mxu0 %v371_v15  ;;  %v599_v32 = vld [vmem:[%s883_s1] ss:$0 sm:$0xff]  ;;  %v403_v38 = vld [vmem:[%s887_s5 + $0x10] sm:$0xff]  ;;  %v402_v39 = vld [vmem:[%s887_s5 + $0x8] sm:$0xff]  ;;  %s321_s22 = sand.u32 1, %s665_s10  }
  0x17   : > { %v779_v0 = vld [vmem:[%s327_s25] sm:$0xff]  ;;  %426 = vmatpush.msra.mxu1 %v407_v19  ;;  %s551_s23 = sshll.u32 %s321_s22, 3  ;;  %s473_s25 = scalar_lea.sflag [#allocation3], %s321_s22 }
  0x18   : > { %v332_v1 = vsel %vm331_vm0, %v779_v0, 0.0  ;;  %394 = vmatpush.msra.mxu0 %v370_v16  ;;  %v600_v35 = vld [vmem:[%s884_s2] ss:$0 sm:$0xff]  ;;  %s323_s17 = scalar_lea.vmem [#allocation2], %s551_s23  ;;  %s627_s27 = scalar_lea.hbm %s626_s26, 8 }
  0x19   : > { %333 = vadd.xlane.f32.xlu0 %v332_v1  ;;  %427 = vmatpush.msra.mxu1 %v406_v20  ;;  %v401_v40 = vld [vmem:[%s887_s5] sm:$0xff]  ;;  %s485_s21 = sshll.u32 %s323_s17, 4  ;;  %p628_p11 = scmp.ne.s32.totalorder %s626_s26, %s627_s27  ;;  %s486_s21 = int_to_ptr.vmem [resolvable:$true] %s485_s21 }
  0x1a   : > { %v606_v3 = vpop.eup %605  ;;  %395 = vmatpush.msra.mxu0 %v369_v17  ;;  %v601_v41 = vld [vmem:[%s886_s4] ss:$0 sm:$0xff]  ;;  %s631_s23 = scalar_lea.hbm %s891_s9, 16  ;;  %p632_p0 = scmp.lt.s32.totalorder %s626_s26, %s891_s9 }
  0x1b   : > { %v336_v4 = vmul.f32 32.0, %v606_v3  ;;  %vm340_vm1 = vweird.f32 %v606_v3  ;;  %428 = vmatpush.msra.mxu1 %v405_v23  ;;  %v602_v45 = vld [vmem:[%s888_s6] ss:$0 sm:$0xff]  ;;  %p629_p12 = pnand %p628_p11, %p764_p5  ;;  %p633_p1 = scmp.lt.s32.totalorder %s631_s23, %s627_s27 }
  0x1d   : > { %v337_v5 = vsub.f32 1.0, %v336_v4  ;;  %429 = vmatpush.msra.mxu1 %v404_v25  ;;  %p630_p13 = pneg %p629_p12  ;;  %p634_p2 = por %p633_p1, %p632_p0 }
  0x1f   : > { %v338_v6 = vmul.f32 %v606_v3, %v337_v5  ;;  %430 = vmatpush.msra.mxu1 %v403_v38  ;;  %p635_p3 = pnand %p634_p2, %p630_p13 }
  0x21   : > { %v339_v7 = vadd.f32 %v606_v3, %v338_v6  ;;  %431 = vmatpush.msra.mxu1 %v402_v39 }
  0x23   : > { %v783_v8 = vsel %vm340_vm1, %v606_v3, %v339_v7  ;;  %432 = vmatpush.msra.mxu1 %v401_v40  ;;  %v604_v3 = vld [vmem:[%s890_s8] ss:$0 sm:$0xff] }
  0x8c   : > { %v334_v9 = vpop.xlane.xlu0 %333 }
  0x8d   : > { %v342_v10 = vmul.f32 %v783_v8, %v334_v9 }
  0x8f   : > { %v343_v11 = vsub.f32 %v779_v0, %v342_v10 }
  0x91   : > { %v344_v12 = vmul.f32 %v343_v11, %v343_v11 }
  0x93   : > { %v345_v13 = vsel %vm331_vm0, %v344_v12, 0.0 }
  0x94   : > { %346 = vadd.xlane.f32.xlu0 %v345_v13 }
 0x107   : > { %v347_v21 = vpop.xlane.xlu0 %346 }
 0x108   : > { %v348_v22 = vmul.f32 %v347_v21, %v783_v8 }
 0x10a   : > { %v349_v24 = vadd.f32 1e-06, %v348_v22 }
 0x10c   : > { %607 = vrsqrt.f32 %v349_v24  ;;  %vm356_vm3 = vweird.f32 %v349_v24 }
 0x112   : > { %v608_v26 = vpop.eup %607 }
 0x113   : > { %v351_v27 = vmul.f32 %v608_v26, %v349_v24  ;;  %vm357_vm2 = vweird.f32 %v608_v26 }
 0x114   : > { %vm358_vm4 = vmor %vm356_vm3, %vm357_vm2 }
 0x115   : > { %v352_v28 = vmul.f32 %v608_v26, %v351_v27 }
 0x117   : > { %v353_v29 = vmul.f32 0.5, %v352_v28 }
 0x119   : > { %v354_v30 = vsub.f32 1.5, %v353_v29 }
 0x11b   : > { %v355_v31 = vmul.f32 %v608_v26, %v354_v30 }
 0x11d   : > { %v359_v33 = vsel %vm358_vm4, %v608_v26, %v355_v31 }
 0x11e   : > { %v360_v34 = vmul.f32 %v359_v33, %v343_v11 }
 0x120   : > { %v364_v36 = vmul.f32 %v599_v32, %v360_v34 }
 0x122   : > { %v368_v37 = vadd.f32 %v600_v35, %v364_v36 }
 0x124   : > { %553 = vmatmul.msk.f32.vlgmr.msra.gmra.mxu0 %vm331_vm0, %v368_v37 }
 0x1a1   : > { %v397_v42 = vpop.f32.mrf.mxu0 }
 0x1a2   : > { %v398_v43 = vadd.f32 %v601_v41, %v397_v42 }
 0x1a4   : > { %v400_v44 = vmax.f32 %v398_v43, 0.0 }
 0x1a6   : > { %554 = vmatmul.msk.f32.vlgmr.msra.gmra.mxu1 %vm413_vm5, %v400_v44 }
 0x223   : > { %v434_v46 = vpop.f32.mrf.mxu1 }
 0x224   : > { %v435_v47 = vadd.f32 %v602_v45, %v434_v46 }
 0x226   : > { %v437_v48 = vadd.f32 %v435_v47, %v779_v0  ;;  %v603_v0 = vld [vmem:[%s889_s7] ss:$0 sm:$0xff] }
 0x228   : > { %v440_v49 = vsel %vm331_vm0, %v437_v48, 0.0 }
 0x229   : > { %441 = vadd.xlane.f32.xlu1 %v440_v49 }
 0x29c   : > { %v442_v50 = vpop.xlane.xlu1 %441 }
 0x29d   : > { %v443_v51 = vmul.f32 %v442_v50, %v783_v8 }
 0x29f   : > { %v444_v52 = vsub.f32 %v437_v48, %v443_v51 }
 0x2a1   : > { %v445_v53 = vmul.f32 %v444_v52, %v444_v52 }
 0x2a3   : > { %v446_v54 = vsel %vm331_vm0, %v445_v53, 0.0 }
 0x2a4   : > { %447 = vadd.xlane.f32.xlu1 %v446_v54 }
 0x317   : > { %v448_v55 = vpop.xlane.xlu1 %447 }
 0x318   : > { %v449_v56 = vmul.f32 %v448_v55, %v783_v8 }
 0x31a   : > { %v450_v57 = vadd.f32 1e-05, %v449_v56 }
 0x31c   : > { %609 = vrsqrt.f32 %v450_v57  ;;  %vm457_vm7 = vweird.f32 %v450_v57 }
 0x322   : > { %v610_v58 = vpop.eup %609 }
 0x323   : > { %v452_v59 = vmul.f32 %v610_v58, %v450_v57  ;;  %vm458_vm6 = vweird.f32 %v610_v58 }
 0x324   : > { %vm459_vm8 = vmor %vm457_vm7, %vm458_vm6 }
 0x325   : > { %v453_v60 = vmul.f32 %v610_v58, %v452_v59 }
 0x327   : > { %v454_v61 = vmul.f32 0.5, %v453_v60 }
 0x329   : > { %v455_v62 = vsub.f32 1.5, %v454_v61 }
 0x32b   : > { %v456_v63 = vmul.f32 %v610_v58, %v455_v62 }
 0x32d   : > { %v460_v1 = vsel %vm459_vm8, %v610_v58, %v456_v63 }
 0x32e   : > { %v461_v2 = vmul.f32 %v460_v1, %v444_v52 }
 0x330   : > { %v465_v4 = vmul.f32 %v603_v0, %v461_v2 }
 0x332   : > { %v469_v5 = vadd.f32 %v604_v3, %v465_v4 }
 0x334   : > { %v470_v6 = vmax.f32 %v469_v5, 0.0 }
 0x336   : > { %471 = vst.msk [vmem:[%s323_s17] sm:$0xff] %vm331_vm0, %v470_v6 }
 0x337   : > { %638 = shalt.err (!%p635_p3)
}
 0x338   : > { %559 = dma.vmem_to_hbm [thread:$0]  (%p764_p5), %s486_s21, 128, %s488_s13, %s473_s25  }
 0x339 PF: > { %p565_p4 = scmp.ge.s32.totalorder %s673_s12, 2  ;;  %s499_s22 = sand.u32 1, %s661_s30  }
 0x33a   : > { %s500_s16 = scalar_lea.sflag [#allocation3], %s499_s22 }
 0x33b   : > { %p562_p7 = pnand %p565_p4, %p768_p6 }
 0x33d   : > { %p563_p8 = pneg %p562_p7 }
 0x33f   : > { %656 = dma.done.wait (%p563_p8), %s500_s16, 128  }
 0x340   : > { %658 = vsyncadd (%p563_p8), %s500_s16, 4294967168  ;;  %p19_p9 = scmp.ge.s32.totalorder %s751_s15, 4   ;;  %s894_s30 = smov %s665_s10 }
 0x341   : > { %s895_s10 = smov %s669_s11  ;;  %s896_s11 = smov %s762_s18 }
 0x342   : > { %s897_s12 = smov %s751_s15  ;;  %21 = sbr.rel (!%p19_p9) target bundleno = 3 (0x3), region = 91 }
 0x347   :  { %506 = vsyncpa [#allocation3], 1 }
 0x348   :  { %508 = vsyncpa [#allocation3 + $0x1], 1 }

// kernel: transformer_encoder_forward.5
= control target key start
LH: loop header
LB: loop body
LE: loop exit
PB: predicated region body
PF: predicated region fallthrough
CT: control target
= control target key end

     0   :  { %s538_s6 = smov 0   ;;  %s597_s0 = inlined_call_operand.vmem [shape: f32[2,8,96], index: 0, kind: input, shape index: {}]   ;;  %s598_s1 = inlined_call_operand.vmem [shape: f32[2,8,32], index: 1, kind: output, shape index: {}]  }
   0x1 LB: > { %s447_s7 = sadd.s32 4294967295, %s512_s6   ;;  %p451_p0 = scmp.ge.s32.totalorder %s512_s6, 1  ;;  %s512_s6 = sphi %s538_s6, %s11_s6  }
   0x2   : > { %p86_p1 = scmp.lt.s32.totalorder %s512_s6, 3 }
   0x4   : > { %p87_p2 = pnand %p451_p0, %p86_p1 }
   0x5   : > { %p104_p3 = scmp.lt.s32.totalorder (!%p87_p2), %s447_s7, 1  ;;  %s514_s12 = smov (!%p87_p2), 96  }
   0x6   : > { %90 = sbr.rel (%p87_p2) target bundleno = 1170 (0x492), region = 24  ;;  %s515_s13 = smov (!%p87_p2), 88  }
   0x7   : > { %s516_s14 = smov (!%p87_p2), 120   ;;  %s517_s15 = smov (!%p87_p2), 64  }
   0x8   : > { %s518_s16 = smov (!%p87_p2), 80   ;;  %s519_s17 = smov (!%p87_p2), 72  }
   0x9   : > { %s520_s18 = smov (!%p87_p2), 112   ;;  %s521_s19 = smov (!%p87_p2), 104  }
   0xa   : > { %s522_s20 = smov (!%p87_p2), 48   ;;  %s523_s21 = smov (!%p87_p2), 56  }
   0xb   : > { %s600_s7 = smov (!%p104_p3, %s447_s7), 1  ;;  %vm117_vm0 = vcmask 64512   ;;  %s524_s22 = smov 40   ;;  %vm388_vm1 = vcmask 130048   ;;  %vm390_vm2 = vcmask 195584   ;;  %vm392_vm3 = vcmask 261120  }
   0xc   : > { %s452_s8 = sshll.u32 %s600_s7, 3  ;;  %s525_s23 = smov 24  }
   0xd   : > { %s107_s11 = scalar_lea.vmem %s597_s0, %s452_s8  ;;  %s526_s24 = smov 8  }
   0xe   : > { %v554_v0 = vld [vmem:[%s107_s11] sm:$0xff]  ;;  %s527_s25 = smov 16   ;;  %s111_s28 = scalar_lea.vmem %s598_s1, %s452_s8 }
   0xf   : > { %115 = vrot.lane.b32.xlu0 %v554_v0, %s514_s12  ;;  %182 = vrot.lane.b32.xlu1 %v554_v0, %s515_s13  ;;  %v113_v2 = vmul.f32 0.35355338, %v554_v0 }
  0x11   : > { %180 = vrot.lane.b32.xlu2 %v113_v2, %s516_s14 }
  0x19   : > { %154 = vrot.lane.b32.xlu2 %v554_v0, %s517_s15 }
  0x21   : > { %247 = vrot.lane.b32.xlu2 %v554_v0, %s518_s16 }
  0x29   : > { %312 = vrot.lane.b32.xlu2 %v554_v0, %s519_s17 }
  0x31   : > { %245 = vrot.lane.b32.xlu2 %v113_v2, %s520_s18 }
  0x6b   : > { %v181_v4 = vpop.permute.xlu2 %180 }
  0x73   : > { %v155_v10 = vpop.permute.xlu2 %154 }
  0x74   : > { %175 = vmatpush.msra.mxu1 %v155_v10 }
  0x7b   : > { %v248_v14 = vpop.permute.xlu2 %247 }
  0x7c   : > { %460 = vmatpush.xpose.msk.msrb.mxu1 %vm117_vm0, %v248_v14 }
  0x81   : > { %v116_v1 = vpop.permute.xlu0 %115  ;;  %v183_v3 = vpop.permute.xlu1 %182 }
  0x82   : > { %454 = vmatpush.xpose.msk.msra.mxu0 %vm117_vm0, %v116_v1  ;;  %457 = vmatpush.xpose.msk.msra.mxu2 %vm117_vm0, %v183_v3 }
  0x83   : > { %v313_v16 = vpop.permute.xlu2 %312 }
  0x85   : > { %455 = vmatmul.msk.f32.vlgmr.msra.gmra.mxu0 %vm117_vm0, %v113_v2  ;;  %458 = vmatmul.msk.f32.vlgmr.msra.gmra.mxu2 %vm117_vm0, %v181_v4 }
  0x86   : > { %463 = vmatpush.xpose.msk.msrb.mxu0 %vm117_vm0, %v313_v16 }
  0x8b   : > { %v246_v20 = vpop.permute.xlu2 %245 }
 0x102   : > { %v140_v5 = vpop.f32.mrf.mxu0 }
 0x103   : > { %v143_v6 = vsel %vm117_vm0, %v140_v5, -inf }
 0x104   : > { %144 = vmax.xlane.f32.xlu0 %v143_v6 }
 0x108   : > { %v205_v13 = vpop.f32.mrf.mxu2 }
 0x109   : > { %v208_v15 = vsel %vm117_vm0, %v205_v13, -inf }
 0x10a   : > { %209 = vmax.xlane.f32.xlu2 %v208_v15 }
 0x177   : > { %v145_v7 = vpop.xlane.xlu0 %144 }
 0x178   : > { %v146_v8 = vsub.f32 %v140_v5, %v145_v7 }
 0x17a   : > { %v147_v9 = vmul.f32 1.442695, %v146_v8 }
 0x17c   : > { %490 = vpow2.f32 %v147_v9 }
 0x17d   : > { %v210_v23 = vpop.xlane.xlu2 %209 }
 0x17e   : > { %v211_v24 = vsub.f32 %v205_v13, %v210_v23 }
 0x180   : > { %v212_v27 = vmul.f32 1.442695, %v211_v24 }
 0x182   : > { %v491_v11 = vpop.eup %490 }
 0x183   : > { %v149_v12 = vsel %vm117_vm0, %v491_v11, 0.0 }
 0x184   : > { %150 = vadd.xlane.f32.xlu1 %v149_v12 }
 0x19d   : > { %310 = vrot.lane.b32.xlu1 %v113_v2, %s521_s19 }
 0x1f7   : > { %v151_v17 = vpop.xlane.xlu1 %150 }
 0x1f8   : > { %492 = vrcp.f32 %v151_v17 }
 0x1f9   : > { %494 = vpow2.f32 %v212_v27 }
 0x1fe   : > { %v493_v18 = vpop.eup %492 }
 0x1ff   : > { %v153_v19 = vmul.f32 %v493_v18, %v491_v11  ;;  %v495_v30 = vpop.eup %494 }
 0x200   : > { %v214_v31 = vsel %vm117_vm0, %v495_v30, 0.0 }
 0x201   : > { %456 = vmatmul.msk.f32.vlgmr.msra.gmra.mxu1 %vm117_vm0, %v153_v19 }
 0x209   : > { %461 = vmatmul.msk.f32.vlgmr.msrb.gmra.mxu1 %vm117_vm0, %v246_v20 }
 0x20f   : > { %v311_v21 = vpop.permute.xlu1 %310 }
 0x210   : > { %464 = vmatmul.msk.f32.vlgmr.msrb.gmra.mxu0 %vm117_vm0, %v311_v21 }
 0x27e   : > { %v574_v22 = vpop.f32.mrf.mxu1 }
 0x286   : > { %v270_v25 = vpop.f32.mrf.mxu1 }
 0x287   : > { %v273_v26 = vsel %vm117_vm0, %v270_v25, -inf }
 0x288   : > { %274 = vmax.xlane.f32.xlu1 %v273_v26 }
 0x28d   : > { %v335_v28 = vpop.f32.mrf.mxu0 }
 0x28e   : > { %v338_v29 = vsel %vm117_vm0, %v335_v28, -inf }
 0x28f   : > { %339 = vmax.xlane.f32.xlu0 %v338_v29 }
 0x297   : > { %215 = vadd.xlane.f32.xlu0 %v214_v31 }
 0x2a1   : > { %284 = vrot.lane.b32.xlu1 %v554_v0, %s522_s20 }
 0x2fb   : > { %v275_v32 = vpop.xlane.xlu1 %274 }
 0x2fc   : > { %v276_v33 = vsub.f32 %v270_v25, %v275_v32 }
 0x2fe   : > { %v277_v34 = vmul.f32 1.442695, %v276_v33 }
 0x300   : > { %496 = vpow2.f32 %v277_v34 }
 0x302   : > { %v340_v35 = vpop.xlane.xlu0 %339 }
 0x303   : > { %v341_v36 = vsub.f32 %v335_v28, %v340_v35 }
 0x305   : > { %v342_v37 = vmul.f32 1.442695, %v341_v36 }
 0x306   : > { %v497_v38 = vpop.eup %496 }
 0x307   : > { %498 = vpow2.f32 %v342_v37  ;;  %v279_v39 = vsel %vm117_vm0, %v497_v38, 0.0 }
 0x308   : > { %280 = vadd.xlane.f32.xlu0 %v279_v39 }
 0x30a   : > { %v216_v42 = vpop.xlane.xlu0 %215 }
 0x30d   : > { %v499_v40 = vpop.eup %498 }
 0x30e   : > { %v344_v41 = vsel %vm117_vm0, %v499_v40, 0.0 }
 0x30f   : > { %345 = vadd.xlane.f32.xlu2 %v344_v41 }
 0x313   : > { %v285_v50 = vpop.permute.xlu1 %284 }
 0x31c   : > { %219 = vrot.lane.b32.xlu0 %v554_v0, %s523_s21 }
 0x327   : > { %349 = vrot.lane.b32.xlu2 %v554_v0, %s524_s22 }
 0x37b   : > { %v281_v44 = vpop.xlane.xlu0 %280 }
 0x382   : > { %v346_v43 = vpop.xlane.xlu2 %345 }
 0x383   : > { %500 = vrcp.f32 %v346_v43 }
 0x384   : > { %502 = vrcp.f32 %v216_v42 }
 0x385   : > { %504 = vrcp.f32 %v281_v44 }
 0x389   : > { %v501_v45 = vpop.eup %500 }
 0x38a   : > { %v350_v46 = vpop.permute.xlu2 %349  ;;  %v348_v47 = vmul.f32 %v501_v45, %v499_v40  ;;  %v503_v48 = vpop.eup %502 }
 0x38b   : > { %370 = vmatpush.msrb.mxu2 %v350_v46  ;;  %v218_v51 = vmul.f32 %v503_v48, %v495_v30  ;;  %v505_v52 = vpop.eup %504 }
 0x38c   : > { %465 = vmatmul.msk.f32.vlgmr.msrb.gmra.mxu2 %vm117_vm0, %v348_v47  ;;  %v283_v53 = vmul.f32 %v505_v52, %v497_v38 }
 0x38e   : > { %v220_v49 = vpop.permute.xlu0 %219 }
 0x38f   : > { %240 = vmatpush.msra.mxu3 %v220_v49 }
 0x390   : > { %459 = vmatmul.msk.f32.vlgmr.msra.gmra.mxu3 %vm117_vm0, %v218_v51 }
 0x391   : > { %305 = vmatpush.msrb.mxu3 %v285_v50 }
 0x398   : > { %462 = vmatmul.msk.f32.vlgmr.msrb.gmra.mxu3 %vm117_vm0, %v283_v53 }
 0x40f   : > { %v372_v54 = vpop.f32.mrf.mxu2 }
 0x410   : > { %384 = vrot.lane.b32.xlu1 %v372_v54, %s525_s23 }
 0x413   : > { %v242_v55 = vpop.f32.mrf.mxu3 }
 0x414   : > { %376 = vrot.lane.b32.xlu0 %v242_v55, %s526_s24 }
 0x41b   : > { %v307_v56 = vpop.f32.mrf.mxu3 }
 0x41c   : > { %380 = vrot.lane.b32.xlu0 %v307_v56, %s527_s25 }
 0x482   : > { %v385_v60 = vpop.permute.xlu1 %384 }
 0x486   : > { %v377_v57 = vpop.permute.xlu0 %376 }
 0x487   : > { %v387_v58 = vsel %vm117_vm0, %v574_v22, %v377_v57 }
 0x48e   : > { %v381_v59 = vpop.permute.xlu0 %380 }
 0x48f   : > { %v389_v61 = vsel %vm388_vm1, %v387_v58, %v381_v59 }
 0x490   : > { %v391_v62 = vsel %vm390_vm2, %v389_v61, %v385_v60 }
 0x491   : > { %393 = vst.msk [vmem:[%s111_s28] sm:$0xff] %vm392_vm3, %v391_v62 }
 0x492 PF: > { %s11_s6 = sadd.s32 1, %s512_s6  }
 0x493   : > { %p8_p4 = scmp.ge.s32.totalorder %s11_s6, 4  }
 0x495   :  { %10 = sbr.rel (!%p8_p4) target bundleno = 1 (0x1), region = 54 }

</bundles_post_ra>
